<compile_context>
chip_gen: v6e
topology: v6e:2x2x1
jax: 0.10.0
libtpu: 0.0.40
codegen_flags: <defaults>
</compile_context>

<pallas_src>
import jax
import jax.numpy as jnp
from jax import lax
from jax.experimental import pallas as pl
from jax.experimental.pallas import tpu as pltpu


def _multihead_kernel(x_ref, w_ref, b_ref, o_ref):
    """Single-step kernel: everything resident in VMEM.

    x_ref: (T, B, C)   time-major activations
    w_ref: (T, C, N)   weight pre-transposed to (in_features, out_features)
    b_ref: (T, 1, N)   bias
    o_ref: (B, T, N)   final layout -> no post-kernel transpose
    """
    T = x_ref.shape[0]
    for t in range(T):  # fully unrolled; T is small and static
        acc = lax.dot_general(
            x_ref[t],                      # (B, C)
            w_ref[t],                      # (C, N)
            dimension_numbers=(((1,), (0,)), ((), ())),  # native (B,C)@(C,N)
            preferred_element_type=jnp.float32,
            precision=lax.Precision.HIGHEST,   # f32 parity with torch Linear
        )                                  # (B, N)
        o_ref[:, t, :] = (acc + b_ref[t]).astype(o_ref.dtype)


def multi_head_forward(x_nchw, weight, bias):
    """MultiHead forward (no-pool branch, num_fcs=0).

    Args:
      x_nchw: (B, C, 1, W) float32 feature map (NCHW, H squeezed to 1).
      weight: (T, N, C) float32, T == W == batch_max_length + 1
              (PyTorch nn.Linear convention: (out_features, in_features)).
      bias:   (T, N) float32.
    Returns:
      (B, T, N) float32, identical to the PyTorch module output.
    """
    B, C, H, W = x_nchw.shape
    assert H == 1, "MultiHead no-pool branch expects H == 1"
    T, N, Cw = weight.shape
    assert T == W and Cw == C
    assert B > 1, "PyTorch x.squeeze() semantics assumed for B > 1"

    # Tiny layout prep; allow_input_fusion lets these fold into operand DMAs.
    x_seq = jnp.transpose(x_nchw[:, :, 0, :], (2, 0, 1))     # (T, B, C)
    w_t = jnp.transpose(weight, (0, 2, 1))                   # (T, C, N)
    b_r = bias.reshape(T, 1, N)                              # (T, 1, N)

    bytes_accessed = 4 * (x_seq.size + w_t.size + b_r.size + B * T * N)

    out = pl.pallas_call(
        _multihead_kernel,
        out_shape=jax.ShapeDtypeStruct((B, T, N), jnp.float32),
        # No grid / no BlockSpecs: whole arrays are brought into VMEM once.
        cost_estimate=pl.CostEstimate(
            flops=2 * T * B * C * N,
            transcendentals=0,
            bytes_accessed=int(bytes_accessed),
        ),
        compiler_params=pltpu.CompilerParams(
            vmem_limit_bytes=4 * 1024 * 1024,        # ~60 KiB actually needed
            allow_input_fusion=[True, True, True],   # fuse transposes/reshape
        ),
    )(x_seq, w_t, b_r)

    return out                                               # (B, T, N)


if __name__ == "__main__":
    # Small, module-consistent shapes:
    #   batch=2, in_channels=32, batch_max_length=8 -> T = W = 9, num_class=37
    B, C, W = 2, 32, 9
    T, N = W, 37

    key = jax.random.PRNGKey(0)
    k_x, k_w, k_b = jax.random.split(key, 3)

    x = jax.random.normal(k_x, (B, C, 1, W), dtype=jnp.float32)          # NCHW
    weight = 0.02 * jax.random.normal(k_w, (T, N, C), dtype=jnp.float32)
    bias = 0.01 * jax.random.normal(k_b, (T, N), dtype=jnp.float32)

    out = jax.block_until_ready(multi_head_forward(x, weight, bias))

    # Pure-JAX reference of the PyTorch forward (no-pool branch).
    x_seq = jnp.transpose(x[:, :, 0, :], (2, 0, 1))                      # (T, B, C)
    ref = jnp.einsum("tbc,tnc->btn", x_seq, weight) + bias[None, :, :]
    assert out.shape == (B, T, N)
    assert jnp.allclose(out, ref, atol=1e-5, rtol=1e-5)

    print("KERNEL_OK")
</pallas_src>

<mosaic_0001>
module attributes {stable_mosaic.version = 11 : i64} {
  func.func @_multihead_kernel(%arg0: memref<9x2x32xf32, #tpu.memory_space<vmem>>, %arg1: memref<9x32x37xf32, #tpu.memory_space<vmem>>, %arg2: memref<9x1x37xf32, #tpu.memory_space<vmem>>, %arg3: memref<2x9x37xf32, #tpu.memory_space<vmem>>) attributes {dimension_semantics = [], scalar_prefetch = 0 : i64, scratch_operands = 0 : i64, tpu.core_type = #tpu.core_type<tc>} {
    %c0 = arith.constant 0 : index
    %c0_0 = arith.constant 0 : index
    %c0_1 = arith.constant 0 : index
    %0 = vector.load %arg0[%c0, %c0_0, %c0_1] : memref<9x2x32xf32, #tpu.memory_space<vmem>>, vector<1x2x32xf32>
    %1 = vector.shape_cast %0 : vector<1x2x32xf32> to vector<2x32xf32>
    %c0_2 = arith.constant 0 : index
    %c0_3 = arith.constant 0 : index
    %c0_4 = arith.constant 0 : index
    %2 = vector.load %arg1[%c0_2, %c0_3, %c0_4] : memref<9x32x37xf32, #tpu.memory_space<vmem>>, vector<1x32x37xf32>
    %3 = vector.shape_cast %2 : vector<1x32x37xf32> to vector<32x37xf32>
    %cst = arith.constant dense<0.000000e+00> : vector<2x37xf32>
    %4 = tpu.matmul %1, %3, %cst {dimension_numbers = #tpu.dot_dimension_numbers<[1], [0], [0], [1], [0, 0, 1, 1], [], []>, precision = #tpu.contract_precision<fp32>} : vector<2x32xf32>, vector<32x37xf32>, vector<2x37xf32> -> vector<2x37xf32>
    %c0_5 = arith.constant 0 : index
    %c0_6 = arith.constant 0 : index
    %c0_7 = arith.constant 0 : index
    %5 = vector.load %arg2[%c0_5, %c0_6, %c0_7] : memref<9x1x37xf32, #tpu.memory_space<vmem>>, vector<1x1x37xf32>
    %6 = vector.shape_cast %5 : vector<1x1x37xf32> to vector<1x37xf32>
    %7 = vector.broadcast %6 : vector<1x37xf32> to vector<2x37xf32>
    %8 = arith.addf %4, %7 : vector<2x37xf32>
    %c0_8 = arith.constant 0 : index
    %c0_9 = arith.constant 0 : index
    %c0_10 = arith.constant 0 : index
    %9 = vector.load %arg3[%c0_8, %c0_9, %c0_10] : memref<2x9x37xf32, #tpu.memory_space<vmem>>, vector<2x1x37xf32>
    %10 = vector.shape_cast %9 : vector<2x1x37xf32> to vector<2x37xf32>
    %11 = vector.shape_cast %8 : vector<2x37xf32> to vector<2x1x37xf32>
    tpu.vector_store %arg3[%c0_8, %c0_9, %c0_10], %11 {strides = array<i32>} : memref<2x9x37xf32, #tpu.memory_space<vmem>>, vector<2x1x37xf32>,
    %c1 = arith.constant 1 : index
    %c0_11 = arith.constant 0 : index
    %c0_12 = arith.constant 0 : index
    %12 = vector.load %arg0[%c1, %c0_11, %c0_12] : memref<9x2x32xf32, #tpu.memory_space<vmem>>, vector<1x2x32xf32>
    %13 = vector.shape_cast %12 : vector<1x2x32xf32> to vector<2x32xf32>
    %c1_13 = arith.constant 1 : index
    %c0_14 = arith.constant 0 : index
    %c0_15 = arith.constant 0 : index
    %14 = vector.load %arg1[%c1_13, %c0_14, %c0_15] : memref<9x32x37xf32, #tpu.memory_space<vmem>>, vector<1x32x37xf32>
    %15 = vector.shape_cast %14 : vector<1x32x37xf32> to vector<32x37xf32>
    %cst_16 = arith.constant dense<0.000000e+00> : vector<2x37xf32>
    %16 = tpu.matmul %13, %15, %cst_16 {dimension_numbers = #tpu.dot_dimension_numbers<[1], [0], [0], [1], [0, 0, 1, 1], [], []>, precision = #tpu.contract_precision<fp32>} : vector<2x32xf32>, vector<32x37xf32>, vector<2x37xf32> -> vector<2x37xf32>
    %c1_17 = arith.constant 1 : index
    %c0_18 = arith.constant 0 : index
    %c0_19 = arith.constant 0 : index
    %17 = vector.load %arg2[%c1_17, %c0_18, %c0_19] : memref<9x1x37xf32, #tpu.memory_space<vmem>>, vector<1x1x37xf32>
    %18 = vector.shape_cast %17 : vector<1x1x37xf32> to vector<1x37xf32>
    %19 = vector.broadcast %18 : vector<1x37xf32> to vector<2x37xf32>
    %20 = arith.addf %16, %19 : vector<2x37xf32>
    %c0_20 = arith.constant 0 : index
    %c1_21 = arith.constant 1 : index
    %c0_22 = arith.constant 0 : index
    %21 = vector.load %arg3[%c0_20, %c1_21, %c0_22] : memref<2x9x37xf32, #tpu.memory_space<vmem>>, vector<2x1x37xf32>
    %22 = vector.shape_cast %21 : vector<2x1x37xf32> to vector<2x37xf32>
    %23 = vector.shape_cast %20 : vector<2x37xf32> to vector<2x1x37xf32>
    tpu.vector_store %arg3[%c0_20, %c1_21, %c0_22], %23 {strides = array<i32>} : memref<2x9x37xf32, #tpu.memory_space<vmem>>, vector<2x1x37xf32>,
    %c2 = arith.constant 2 : index
    %c0_23 = arith.constant 0 : index
    %c0_24 = arith.constant 0 : index
    %24 = vector.load %arg0[%c2, %c0_23, %c0_24] : memref<9x2x32xf32, #tpu.memory_space<vmem>>, vector<1x2x32xf32>
    %25 = vector.shape_cast %24 : vector<1x2x32xf32> to vector<2x32xf32>
    %c2_25 = arith.constant 2 : index
    %c0_26 = arith.constant 0 : index
    %c0_27 = arith.constant 0 : index
    %26 = vector.load %arg1[%c2_25, %c0_26, %c0_27] : memref<9x32x37xf32, #tpu.memory_space<vmem>>, vector<1x32x37xf32>
    %27 = vector.shape_cast %26 : vector<1x32x37xf32> to vector<32x37xf32>
    %cst_28 = arith.constant dense<0.000000e+00> : vector<2x37xf32>
    %28 = tpu.matmul %25, %27, %cst_28 {dimension_numbers = #tpu.dot_dimension_numbers<[1], [0], [0], [1], [0, 0, 1, 1], [], []>, precision = #tpu.contract_precision<fp32>} : vector<2x32xf32>, vector<32x37xf32>, vector<2x37xf32> -> vector<2x37xf32>
    %c2_29 = arith.constant 2 : index
    %c0_30 = arith.constant 0 : index
    %c0_31 = arith.constant 0 : index
    %29 = vector.load %arg2[%c2_29, %c0_30, %c0_31] : memref<9x1x37xf32, #tpu.memory_space<vmem>>, vector<1x1x37xf32>
    %30 = vector.shape_cast %29 : vector<1x1x37xf32> to vector<1x37xf32>
    %31 = vector.broadcast %30 : vector<1x37xf32> to vector<2x37xf32>
    %32 = arith.addf %28, %31 : vector<2x37xf32>
    %c0_32 = arith.constant 0 : index
    %c2_33 = arith.constant 2 : index
    %c0_34 = arith.constant 0 : index
    %33 = vector.load %arg3[%c0_32, %c2_33, %c0_34] : memref<2x9x37xf32, #tpu.memory_space<vmem>>, vector<2x1x37xf32>
    %34 = vector.shape_cast %33 : vector<2x1x37xf32> to vector<2x37xf32>
    %35 = vector.shape_cast %32 : vector<2x37xf32> to vector<2x1x37xf32>
    tpu.vector_store %arg3[%c0_32, %c2_33, %c0_34], %35 {strides = array<i32>} : memref<2x9x37xf32, #tpu.memory_space<vmem>>, vector<2x1x37xf32>,
    %c3 = arith.constant 3 : index
    %c0_35 = arith.constant 0 : index
    %c0_36 = arith.constant 0 : index
    %36 = vector.load %arg0[%c3, %c0_35, %c0_36] : memref<9x2x32xf32, #tpu.memory_space<vmem>>, vector<1x2x32xf32>
    %37 = vector.shape_cast %36 : vector<1x2x32xf32> to vector<2x32xf32>
    %c3_37 = arith.constant 3 : index
    %c0_38 = arith.constant 0 : index
    %c0_39 = arith.constant 0 : index
    %38 = vector.load %arg1[%c3_37, %c0_38, %c0_39] : memref<9x32x37xf32, #tpu.memory_space<vmem>>, vector<1x32x37xf32>
    %39 = vector.shape_cast %38 : vector<1x32x37xf32> to vector<32x37xf32>
    %cst_40 = arith.constant dense<0.000000e+00> : vector<2x37xf32>
    %40 = tpu.matmul %37, %39, %cst_40 {dimension_numbers = #tpu.dot_dimension_numbers<[1], [0], [0], [1], [0, 0, 1, 1], [], []>, precision = #tpu.contract_precision<fp32>} : vector<2x32xf32>, vector<32x37xf32>, vector<2x37xf32> -> vector<2x37xf32>
    %c3_41 = arith.constant 3 : index
    %c0_42 = arith.constant 0 : index
    %c0_43 = arith.constant 0 : index
    %41 = vector.load %arg2[%c3_41, %c0_42, %c0_43] : memref<9x1x37xf32, #tpu.memory_space<vmem>>, vector<1x1x37xf32>
    %42 = vector.shape_cast %41 : vector<1x1x37xf32> to vector<1x37xf32>
    %43 = vector.broadcast %42 : vector<1x37xf32> to vector<2x37xf32>
    %44 = arith.addf %40, %43 : vector<2x37xf32>
    %c0_44 = arith.constant 0 : index
    %c3_45 = arith.constant 3 : index
    %c0_46 = arith.constant 0 : index
    %45 = vector.load %arg3[%c0_44, %c3_45, %c0_46] : memref<2x9x37xf32, #tpu.memory_space<vmem>>, vector<2x1x37xf32>
    %46 = vector.shape_cast %45 : vector<2x1x37xf32> to vector<2x37xf32>
    %47 = vector.shape_cast %44 : vector<2x37xf32> to vector<2x1x37xf32>
    tpu.vector_store %arg3[%c0_44, %c3_45, %c0_46], %47 {strides = array<i32>} : memref<2x9x37xf32, #tpu.memory_space<vmem>>, vector<2x1x37xf32>,
    %c4 = arith.constant 4 : index
    %c0_47 = arith.constant 0 : index
    %c0_48 = arith.constant 0 : index
    %48 = vector.load %arg0[%c4, %c0_47, %c0_48] : memref<9x2x32xf32, #tpu.memory_space<vmem>>, vector<1x2x32xf32>
    %49 = vector.shape_cast %48 : vector<1x2x32xf32> to vector<2x32xf32>
    %c4_49 = arith.constant 4 : index
    %c0_50 = arith.constant 0 : index
    %c0_51 = arith.constant 0 : index
    %50 = vector.load %arg1[%c4_49, %c0_50, %c0_51] : memref<9x32x37xf32, #tpu.memory_space<vmem>>, vector<1x32x37xf32>
    %51 = vector.shape_cast %50 : vector<1x32x37xf32> to vector<32x37xf32>
    %cst_52 = arith.constant dense<0.000000e+00> : vector<2x37xf32>
    %52 = tpu.matmul %49, %51, %cst_52 {dimension_numbers = #tpu.dot_dimension_numbers<[1], [0], [0], [1], [0, 0, 1, 1], [], []>, precision = #tpu.contract_precision<fp32>} : vector<2x32xf32>, vector<32x37xf32>, vector<2x37xf32> -> vector<2x37xf32>
    %c4_53 = arith.constant 4 : index
    %c0_54 = arith.constant 0 : index
    %c0_55 = arith.constant 0 : index
    %53 = vector.load %arg2[%c4_53, %c0_54, %c0_55] : memref<9x1x37xf32, #tpu.memory_space<vmem>>, vector<1x1x37xf32>
    %54 = vector.shape_cast %53 : vector<1x1x37xf32> to vector<1x37xf32>
    %55 = vector.broadcast %54 : vector<1x37xf32> to vector<2x37xf32>
    %56 = arith.addf %52, %55 : vector<2x37xf32>
    %c0_56 = arith.constant 0 : index
    %c4_57 = arith.constant 4 : index
    %c0_58 = arith.constant 0 : index
    %57 = vector.load %arg3[%c0_56, %c4_57, %c0_58] : memref<2x9x37xf32, #tpu.memory_space<vmem>>, vector<2x1x37xf32>
    %58 = vector.shape_cast %57 : vector<2x1x37xf32> to vector<2x37xf32>
    %59 = vector.shape_cast %56 : vector<2x37xf32> to vector<2x1x37xf32>
    tpu.vector_store %arg3[%c0_56, %c4_57, %c0_58], %59 {strides = array<i32>} : memref<2x9x37xf32, #tpu.memory_space<vmem>>, vector<2x1x37xf32>,
    %c5 = arith.constant 5 : index
    %c0_59 = arith.constant 0 : index
    %c0_60 = arith.constant 0 : index
    %60 = vector.load %arg0[%c5, %c0_59, %c0_60] : memref<9x2x32xf32, #tpu.memory_space<vmem>>, vector<1x2x32xf32>
    %61 = vector.shape_cast %60 : vector<1x2x32xf32> to vector<2x32xf32>
    %c5_61 = arith.constant 5 : index
    %c0_62 = arith.constant 0 : index
    %c0_63 = arith.constant 0 : index
    %62 = vector.load %arg1[%c5_61, %c0_62, %c0_63] : memref<9x32x37xf32, #tpu.memory_space<vmem>>, vector<1x32x37xf32>
    %63 = vector.shape_cast %62 : vector<1x32x37xf32> to vector<32x37xf32>
    %cst_64 = arith.constant dense<0.000000e+00> : vector<2x37xf32>
    %64 = tpu.matmul %61, %63, %cst_64 {dimension_numbers = #tpu.dot_dimension_numbers<[1], [0], [0], [1], [0, 0, 1, 1], [], []>, precision = #tpu.contract_precision<fp32>} : vector<2x32xf32>, vector<32x37xf32>, vector<2x37xf32> -> vector<2x37xf32>
    %c5_65 = arith.constant 5 : index
    %c0_66 = arith.constant 0 : index
    %c0_67 = arith.constant 0 : index
    %65 = vector.load %arg2[%c5_65, %c0_66, %c0_67] : memref<9x1x37xf32, #tpu.memory_space<vmem>>, vector<1x1x37xf32>
    %66 = vector.shape_cast %65 : vector<1x1x37xf32> to vector<1x37xf32>
    %67 = vector.broadcast %66 : vector<1x37xf32> to vector<2x37xf32>
    %68 = arith.addf %64, %67 : vector<2x37xf32>
    %c0_68 = arith.constant 0 : index
    %c5_69 = arith.constant 5 : index
    %c0_70 = arith.constant 0 : index
    %69 = vector.load %arg3[%c0_68, %c5_69, %c0_70] : memref<2x9x37xf32, #tpu.memory_space<vmem>>, vector<2x1x37xf32>
    %70 = vector.shape_cast %69 : vector<2x1x37xf32> to vector<2x37xf32>
    %71 = vector.shape_cast %68 : vector<2x37xf32> to vector<2x1x37xf32>
    tpu.vector_store %arg3[%c0_68, %c5_69, %c0_70], %71 {strides = array<i32>} : memref<2x9x37xf32, #tpu.memory_space<vmem>>, vector<2x1x37xf32>,
    %c6 = arith.constant 6 : index
    %c0_71 = arith.constant 0 : index
    %c0_72 = arith.constant 0 : index
    %72 = vector.load %arg0[%c6, %c0_71, %c0_72] : memref<9x2x32xf32, #tpu.memory_space<vmem>>, vector<1x2x32xf32>
    %73 = vector.shape_cast %72 : vector<1x2x32xf32> to vector<2x32xf32>
    %c6_73 = arith.constant 6 : index
    %c0_74 = arith.constant 0 : index
    %c0_75 = arith.constant 0 : index
    %74 = vector.load %arg1[%c6_73, %c0_74, %c0_75] : memref<9x32x37xf32, #tpu.memory_space<vmem>>, vector<1x32x37xf32>
    %75 = vector.shape_cast %74 : vector<1x32x37xf32> to vector<32x37xf32>
    %cst_76 = arith.constant dense<0.000000e+00> : vector<2x37xf32>
    %76 = tpu.matmul %73, %75, %cst_76 {dimension_numbers = #tpu.dot_dimension_numbers<[1], [0], [0], [1], [0, 0, 1, 1], [], []>, precision = #tpu.contract_precision<fp32>} : vector<2x32xf32>, vector<32x37xf32>, vector<2x37xf32> -> vector<2x37xf32>
    %c6_77 = arith.constant 6 : index
    %c0_78 = arith.constant 0 : index
    %c0_79 = arith.constant 0 : index
    %77 = vector.load %arg2[%c6_77, %c0_78, %c0_79] : memref<9x1x37xf32, #tpu.memory_space<vmem>>, vector<1x1x37xf32>
    %78 = vector.shape_cast %77 : vector<1x1x37xf32> to vector<1x37xf32>
    %79 = vector.broadcast %78 : vector<1x37xf32> to vector<2x37xf32>
    %80 = arith.addf %76, %79 : vector<2x37xf32>
    %c0_80 = arith.constant 0 : index
    %c6_81 = arith.constant 6 : index
    %c0_82 = arith.constant 0 : index
    %81 = vector.load %arg3[%c0_80, %c6_81, %c0_82] : memref<2x9x37xf32, #tpu.memory_space<vmem>>, vector<2x1x37xf32>
    %82 = vector.shape_cast %81 : vector<2x1x37xf32> to vector<2x37xf32>
    %83 = vector.shape_cast %80 : vector<2x37xf32> to vector<2x1x37xf32>
    tpu.vector_store %arg3[%c0_80, %c6_81, %c0_82], %83 {strides = array<i32>} : memref<2x9x37xf32, #tpu.memory_space<vmem>>, vector<2x1x37xf32>,
    %c7 = arith.constant 7 : index
    %c0_83 = arith.constant 0 : index
    %c0_84 = arith.constant 0 : index
    %84 = vector.load %arg0[%c7, %c0_83, %c0_84] : memref<9x2x32xf32, #tpu.memory_space<vmem>>, vector<1x2x32xf32>
    %85 = vector.shape_cast %84 : vector<1x2x32xf32> to vector<2x32xf32>
    %c7_85 = arith.constant 7 : index
    %c0_86 = arith.constant 0 : index
    %c0_87 = arith.constant 0 : index
    %86 = vector.load %arg1[%c7_85, %c0_86, %c0_87] : memref<9x32x37xf32, #tpu.memory_space<vmem>>, vector<1x32x37xf32>
    %87 = vector.shape_cast %86 : vector<1x32x37xf32> to vector<32x37xf32>
    %cst_88 = arith.constant dense<0.000000e+00> : vector<2x37xf32>
    %88 = tpu.matmul %85, %87, %cst_88 {dimension_numbers = #tpu.dot_dimension_numbers<[1], [0], [0], [1], [0, 0, 1, 1], [], []>, precision = #tpu.contract_precision<fp32>} : vector<2x32xf32>, vector<32x37xf32>, vector<2x37xf32> -> vector<2x37xf32>
    %c7_89 = arith.constant 7 : index
    %c0_90 = arith.constant 0 : index
    %c0_91 = arith.constant 0 : index
    %89 = vector.load %arg2[%c7_89, %c0_90, %c0_91] : memref<9x1x37xf32, #tpu.memory_space<vmem>>, vector<1x1x37xf32>
    %90 = vector.shape_cast %89 : vector<1x1x37xf32> to vector<1x37xf32>
    %91 = vector.broadcast %90 : vector<1x37xf32> to vector<2x37xf32>
    %92 = arith.addf %88, %91 : vector<2x37xf32>
    %c0_92 = arith.constant 0 : index
    %c7_93 = arith.constant 7 : index
    %c0_94 = arith.constant 0 : index
    %93 = vector.load %arg3[%c0_92, %c7_93, %c0_94] : memref<2x9x37xf32, #tpu.memory_space<vmem>>, vector<2x1x37xf32>
    %94 = vector.shape_cast %93 : vector<2x1x37xf32> to vector<2x37xf32>
    %95 = vector.shape_cast %92 : vector<2x37xf32> to vector<2x1x37xf32>
    tpu.vector_store %arg3[%c0_92, %c7_93, %c0_94], %95 {strides = array<i32>} : memref<2x9x37xf32, #tpu.memory_space<vmem>>, vector<2x1x37xf32>,
    %c8 = arith.constant 8 : index
    %c0_95 = arith.constant 0 : index
    %c0_96 = arith.constant 0 : index
    %96 = vector.load %arg0[%c8, %c0_95, %c0_96] : memref<9x2x32xf32, #tpu.memory_space<vmem>>, vector<1x2x32xf32>
    %97 = vector.shape_cast %96 : vector<1x2x32xf32> to vector<2x32xf32>
    %c8_97 = arith.constant 8 : index
    %c0_98 = arith.constant 0 : index
    %c0_99 = arith.constant 0 : index
    %98 = vector.load %arg1[%c8_97, %c0_98, %c0_99] : memref<9x32x37xf32, #tpu.memory_space<vmem>>, vector<1x32x37xf32>
    %99 = vector.shape_cast %98 : vector<1x32x37xf32> to vector<32x37xf32>
    %cst_100 = arith.constant dense<0.000000e+00> : vector<2x37xf32>
    %100 = tpu.matmul %97, %99, %cst_100 {dimension_numbers = #tpu.dot_dimension_numbers<[1], [0], [0], [1], [0, 0, 1, 1], [], []>, precision = #tpu.contract_precision<fp32>} : vector<2x32xf32>, vector<32x37xf32>, vector<2x37xf32> -> vector<2x37xf32>
    %c8_101 = arith.constant 8 : index
    %c0_102 = arith.constant 0 : index
    %c0_103 = arith.constant 0 : index
    %101 = vector.load %arg2[%c8_101, %c0_102, %c0_103] : memref<9x1x37xf32, #tpu.memory_space<vmem>>, vector<1x1x37xf32>
    %102 = vector.shape_cast %101 : vector<1x1x37xf32> to vector<1x37xf32>
    %103 = vector.broadcast %102 : vector<1x37xf32> to vector<2x37xf32>
    %104 = arith.addf %100, %103 : vector<2x37xf32>
    %c0_104 = arith.constant 0 : index
    %c8_105 = arith.constant 8 : index
    %c0_106 = arith.constant 0 : index
    %105 = vector.load %arg3[%c0_104, %c8_105, %c0_106] : memref<2x9x37xf32, #tpu.memory_space<vmem>>, vector<2x1x37xf32>
    %106 = vector.shape_cast %105 : vector<2x1x37xf32> to vector<2x37xf32>
    %107 = vector.shape_cast %104 : vector<2x37xf32> to vector<2x1x37xf32>
    tpu.vector_store %arg3[%c0_104, %c8_105, %c0_106], %107 {strides = array<i32>} : memref<2x9x37xf32, #tpu.memory_space<vmem>>, vector<2x1x37xf32>,
    return
  }
}

</mosaic_0001>

<bundles_post_ra>
// kernel: tpu_custom_call.1
= control target key start
LH: loop header
LB: loop body
LE: loop exit
PB: predicated region body
PF: predicated region fallthrough
CT: control target
= control target key end

     0   :  { %8 = vsyncpa [#allocation3], 0  ;;  %s6912_s0 = inlined_call_operand.hbm [shape: f32[9,2,32], index: 0, kind: input, shape index: {}]   ;;  %s6913_s1 = inlined_call_operand.hbm [shape: f32[9,32,37], index: 1, kind: input, shape index: {}]   ;;  %s6914_s2 = inlined_call_operand.hbm [shape: f32[9,1,37], index: 2, kind: input, shape index: {}]   ;;  %s6915_s3 = inlined_call_operand.vmem [shape: f32[2,9,37], index: 3, kind: output, shape index: {}]  }
   0x1   :  { %9 = vsyncpa [#allocation5], 0  ;;  %s5779_s12 = smov [#allocation4]  }
   0x2   :  { %s27_s13 = sshll.u32 %s5779_s12, 4  ;;  %s28_s13 = int_to_ptr.vmem [resolvable:$true] %s27_s13 }
   0x3   :  { %s5723_s14 = scalar_lea.vmem %s28_s13, 4608  ;;  %p5728_p1 = scmp.lt.s32.totalorder %s28_s13, %s28_s13 }
   0x4   :  { %p5724_p0 = scmp.ne.s32.totalorder %s28_s13, %s5723_s14  ;;  %p5729_p2 = scmp.lt.s32.totalorder %s5723_s14, %s5723_s14 }
   0x6   :  { %p5730_p3 = por %p5729_p2, %p5728_p1 }
   0x8   :  { %p5731_p4 = pnand %p5730_p3, %p5724_p0 }
   0xa   :  { %5734 = shalt.err (!%p5731_p4)
}
   0xb   :  { %s5780_s15 = smov 128   ;;  %s5781_s16 = smov 8  }
   0xc   :  { %33 = dma.hbm_to_vmem [thread:$0]  %s6913_s1, 4608, %s28_s13, [#allocation5], %s5780_s15, %s5780_s15, %s5781_s16  }
   0xd   :  { %s5782_s19 = smov [#allocation2]  }
   0xe   :  { %s15_s20 = sshll.u32 %s5782_s19, 4  ;;  %s16_s20 = int_to_ptr.vmem [resolvable:$true] %s15_s20 }
   0xf   :  { %s5743_s21 = scalar_lea.vmem %s16_s20, 288  ;;  %p5748_p6 = scmp.lt.s32.totalorder %s16_s20, %s16_s20 }
  0x10   :  { %p5744_p5 = scmp.ne.s32.totalorder %s16_s20, %s5743_s21  ;;  %p5749_p7 = scmp.lt.s32.totalorder %s5743_s21, %s5743_s21 }
  0x12   :  { %p5750_p8 = por %p5749_p7, %p5748_p6 }
  0x14   :  { %p5751_p9 = pnand %p5750_p8, %p5744_p5 }
  0x16   :  { %5754 = shalt.err (!%p5751_p9)
}
  0x17   :  { %s5783_s22 = smov 32   ;;  %s5784_s23 = smov 2  }
  0x18   :  { %21 = dma.hbm_to_vmem [thread:$0]  %s6912_s0, 288, %s16_s20, [#allocation3], %s5783_s22, %s5783_s22, %s5784_s23  }
  0x19   :  { %s5785_s26 = smov [#allocation6]  }
  0x1a   :  { %s39_s27 = sshll.u32 %s5785_s26, 4  ;;  %s40_s27 = int_to_ptr.vmem [resolvable:$true] %s39_s27 }
  0x1b   :  { %s5763_s1 = scalar_lea.vmem %s40_s27, 144  ;;  %s5767_s28 = scalar_lea.vmem %s40_s27, 160 }
  0x1c   :  { %p5764_p10 = scmp.ne.s32.totalorder %s40_s27, %s5763_s1  ;;  %p5768_p11 = scmp.lt.s32.totalorder %s40_s27, %s40_s27 }
  0x1d   :  { %p5769_p12 = scmp.lt.s32.totalorder %s5767_s28, %s5763_s1 }
  0x1f   :  { %p5770_p13 = por %p5769_p12, %p5768_p11 }
  0x21   :  { %p5771_p0 = pnand %p5770_p13, %p5764_p10 }
  0x23   :  { %5774 = shalt.err (!%p5771_p0)
}
  0x24   :  { %s5786_s29 = smov 16   ;;  %s5787_s30 = smov 1  }
  0x25   :  { %45 = dma.hbm_to_vmem [thread:$0]  %s6914_s2, 144, %s40_s27, [#allocation5], %s5786_s29, %s5786_s29, %s5787_s30  }
  0x26   :  { %5775 = dma.done.wait [#allocation3], 288  }
  0x27   :  { %5776 = vsyncadd [#allocation3], 4294967008 }
  0x28   :  { %5777 = dma.done.wait [#allocation5], 4752  }
  0x29   :  { %5778 = vsyncadd [#allocation5], 4294962544  ;;  %v5788_v0 = vmov 0.0   ;;  %vm5789_vm0 = vmmov 0   ;;  %vm67_vm1 = vcmask 261120   ;;  %v59_v1 = vld [vmem:[#allocation4 + $0x18] sm:$0xff] }
  0x2a   :  { %5109 = vmatprep.subr.mxu0 %v5788_v0  ;;  %5120 = vmatprep.subr.mxu1 %v5788_v0  ;;  %v58_v2 = vld [vmem:[#allocation4 + $0x10] sm:$0xff]  ;;  %v57_v3 = vld [vmem:[#allocation4 + $0x8] sm:$0xff]  ;;  %v5826_v4 = vand.u32 4294901760, %v59_v1  ;;  %v56_v7 = vld [vmem:[#allocation4] sm:$0xff]  ;;  %vm581_vm2 = vcmask 294912  }
  0x2b   :  { %5117 = vmatprep.mubr.msk.f32.mxu0 %vm5789_vm0, %v5788_v0  ;;  %5128 = vmatprep.mubr.msk.f32.mxu1 %vm5789_vm0, %v5788_v0  ;;  %v5828_v5 = vand.u32 4294901760, %v58_v2  ;;  %v5830_v6 = vand.u32 4294901760, %v57_v3  ;;  %v55_v8 = vld [vmem:[#allocation2] sm:$0x3]  ;;  %v5832_v9 = vand.u32 4294901760, %v56_v7  ;;  %v590_v33 = vld [vmem:[#allocation4 + $0x38] sm:$0xff] }
  0x2c   :  { %v69_v10 = vsel %vm67_vm1, %v55_v8, 0  ;;  %5110 = vmatpush3.msra.mxu0 %v5826_v4  ;;  %v176_v11 = vsub.f32 %v59_v1, %v5826_v4  ;;  %v585_v32 = vld [vmem:[#allocation2 + $0x2] sm:$0x3]  ;;  %v5883_v35 = vand.u32 4294901760, %v590_v33  ;;  %v588_v37 = vld [vmem:[#allocation4 + $0x28] sm:$0xff]  ;;  %v587_v41 = vld [vmem:[#allocation4 + $0x20] sm:$0xff] }
  0x2d   :  { %v5837_v12 = vand.u32 4294901760, %v69_v10  ;;  %v5840_v13 = vsub.f32 %v58_v2, %v5828_v5  ;;  %v5843_v14 = vsub.f32 %v57_v3, %v5830_v6  ;;  %5111 = vmatprep.subr.mxu0 %v5788_v0  ;;  %v5847_v15 = vsub.f32 %v56_v7, %v5832_v9  ;;  %v589_v36 = vld [vmem:[#allocation4 + $0x30] sm:$0xff]  ;;  %v1120_v1 = vld [vmem:[#allocation4 + $0x58] sm:$0xff] }
  0x2e   :  { %5112 = vmatpush3.msra.mxu0 %v5828_v5  ;;  %v177_v16 = vand.u32 4294901760, %v176_v11  ;;  %v600_v34 = vsel %vm67_vm1, %v585_v32, 0  ;;  %v5893_v39 = vand.u32 4294901760, %v589_v36  ;;  %v5898_v40 = vsub.f32 %v590_v33, %v5883_v35  ;;  %v1115_v63 = vld [vmem:[#allocation2 + $0x4] sm:$0x3]  ;;  %v1650_v32 = vld [vmem:[#allocation4 + $0x78] sm:$0xff] }
  0x2f   :  { %v5851_v17 = vsub.f32 %v69_v10, %v5837_v12  ;;  %v184_v18 = vand.u32 4294901760, %v5840_v13  ;;  %v191_v19 = vand.u32 4294901760, %v5843_v14  ;;  %5113 = vmatprep.subr.mxu0 %v5788_v0  ;;  %v198_v20 = vand.u32 4294901760, %v5847_v15 }
  0x30   :  { %5114 = vmatpush3.msra.mxu0 %v5830_v6  ;;  %v178_v21 = vsub.f32 %v176_v11, %v177_v16  ;;  %v5890_v38 = vand.u32 4294901760, %v600_v34  ;;  %v5901_v42 = vand.u32 4294901760, %v588_v37  ;;  %v5912_v44 = vsub.f32 %v589_v36, %v5893_v39  ;;  %v1648_v36 = vld [vmem:[#allocation4 + $0x68] sm:$0xff] }
  0x31   :  { %v142_v22 = vand.u32 4294901760, %v5851_v17  ;;  %v185_v23 = vsub.f32 %v5840_v13, %v184_v18  ;;  %v192_v24 = vsub.f32 %v5843_v14, %v191_v19  ;;  %5115 = vmatprep.subr.mxu0 %v5788_v0  ;;  %v199_v28 = vsub.f32 %v5847_v15, %v198_v20 }
  0x32   :  { %5116 = vmatpush3.msra.mxu0 %v5832_v9  ;;  %v179_v25 = vand.u32 4294901760, %v178_v21  ;;  %v5906_v43 = vsub.f32 %v600_v34, %v5890_v38  ;;  %v5914_v45 = vand.u32 4294901760, %v587_v41  ;;  %v708_v46 = vand.u32 4294901760, %v5898_v40 }
  0x33   :  { %v143_v26 = vsub.f32 %v5851_v17, %v142_v22  ;;  %v186_v27 = vand.u32 4294901760, %v185_v23  ;;  %5131 = vmatprep.subr.mxu0 %v5788_v0  ;;  %v193_v30 = vand.u32 4294901760, %v192_v24  ;;  %v200_v31 = vand.u32 4294901760, %v199_v28 }
  0x34   :  { %5121 = vmatpush3.msra.mxu1 %v179_v25  ;;  %v5922_v47 = vsub.f32 %v588_v37, %v5901_v42  ;;  %v673_v48 = vand.u32 4294901760, %v5906_v43  ;;  %v5932_v49 = vsub.f32 %v587_v41, %v5914_v45  ;;  %v715_v50 = vand.u32 4294901760, %v5912_v44 }
  0x35   :  { %v144_v29 = vand.u32 4294901760, %v143_v26  ;;  %5122 = vmatprep.subr.mxu1 %v5788_v0  ;;  %v709_v51 = vsub.f32 %v5898_v40, %v708_v46  ;;  %v1130_v2 = vsel %vm67_vm1, %v1115_v63, 0  ;;  %v5989_v3 = vand.u32 4294901760, %v1120_v1  ;;  %v2180_v63 = vld [vmem:[#allocation4 + $0x98] sm:$0xff] }
  0x36   :  { %5123 = vmatpush3.msra.mxu1 %v186_v27  ;;  %v722_v52 = vand.u32 4294901760, %v5922_v47  ;;  %v674_v53 = vsub.f32 %v5906_v43, %v673_v48  ;;  %v716_v54 = vsub.f32 %v5912_v44, %v715_v50  ;;  %v729_v55 = vand.u32 4294901760, %v5932_v49 }
  0x37   :  { %5118 = vmatmul.mubr.f32.vlgmr.msra.gmra.mxu0 %v144_v29  ;;  %5124 = vmatprep.subr.mxu1 %v5788_v0  ;;  %v710_v56 = vand.u32 4294901760, %v709_v51  ;;  %v6006_v8 = vsub.f32 %v1120_v1, %v5989_v3  ;;  %v6101_v34 = vand.u32 4294901760, %v1650_v32  ;;  %v6123_v41 = vand.u32 4294901760, %v1648_v36 }
  0x38   :  { %5132 = vmatpush3.msra.mxu0 %v176_v11  ;;  %5125 = vmatpush3.msra.mxu1 %v193_v30  ;;  %v723_v57 = vsub.f32 %v5922_v47, %v722_v52  ;;  %v675_v58 = vand.u32 4294901760, %v674_v53  ;;  %v717_v59 = vand.u32 4294901760, %v716_v54  ;;  %v730_v60 = vsub.f32 %v5932_v49, %v729_v55 }
  0x39   :  { %5133 = vmatprep.subr.mxu0 %v5788_v0  ;;  %5126 = vmatprep.subr.mxu1 %v5788_v0 }
  0x3a   :  { %5134 = vmatpush3.msra.mxu0 %v5840_v13  ;;  %5127 = vmatpush3.msra.mxu1 %v200_v31  ;;  %v724_v61 = vand.u32 4294901760, %v723_v57  ;;  %v731_v62 = vand.u32 4294901760, %v730_v60  ;;  %v1645_v31 = vld [vmem:[#allocation2 + $0x6] sm:$0x3] }
  0x3b   :  { %5135 = vmatprep.subr.mxu0 %v5788_v0  ;;  %5129 = vmatmul.mubr.f32.vlgmr.msra.gmra.mxu1 %v5837_v12  ;;  %v1660_v33 = vsel %vm67_vm1, %v1645_v31, 0  ;;  %v2710_v31 = vld [vmem:[#allocation4 + $0xb8] sm:$0xff] }
  0x3c   :  { %5136 = vmatpush3.msra.mxu0 %v5843_v14  ;;  %5142 = vmatprep.subr.mxu1 %v5788_v0  ;;  %v1238_v14 = vand.u32 4294901760, %v6006_v8  ;;  %v6108_v37 = vand.u32 4294901760, %v1660_v33 }
  0x3d   :  { %5137 = vmatprep.subr.mxu0 %v5788_v0  ;;  %5143 = vmatpush3.msra.mxu1 %v5826_v4 }
  0x3e   :  { %5138 = vmatpush3.msra.mxu0 %v5847_v15  ;;  %5139 = vmatprep.mubr.msk.f32.mxu0 %vm5789_vm0, %v5788_v0 }
  0x3f   :  { %5144 = vmatprep.subr.mxu1 %v5788_v0  ;;  %5153 = vmatprep.subr.mxu0 %v5788_v0 }
  0x40   :  { %5140 = vmatmul.mubr.f32.vlgmr.msra.gmra.mxu0 %v5851_v17  ;;  %5145 = vmatpush3.msra.mxu1 %v5828_v5 }
  0x41   :  { %5154 = vmatpush3.msra.mxu0 %v177_v16  ;;  %5146 = vmatprep.subr.mxu1 %v5788_v0 }
  0x42   :  { %5155 = vmatprep.subr.mxu0 %v5788_v0  ;;  %5147 = vmatpush3.msra.mxu1 %v5830_v6 }
  0x43   :  { %5156 = vmatpush3.msra.mxu0 %v184_v18  ;;  %5148 = vmatprep.subr.mxu1 %v5788_v0 }
  0x44   :  { %5157 = vmatprep.subr.mxu0 %v5788_v0  ;;  %5149 = vmatpush3.msra.mxu1 %v5832_v9 }
  0x45   :  { %5150 = vmatprep.mubr.msk.f32.mxu1 %vm5789_vm0, %v5788_v0  ;;  %5158 = vmatpush3.msra.mxu0 %v191_v19  ;;  %v1239_v19 = vsub.f32 %v6006_v8, %v1238_v14 }
  0x46   :  { %5151 = vmatmul.mubr.f32.vlgmr.msra.gmra.mxu1 %v142_v22  ;;  %5159 = vmatprep.subr.mxu0 %v5788_v0 }
  0x47   :  { %5164 = vmatprep.subr.mxu1 %v5788_v0  ;;  %5160 = vmatpush3.msra.mxu0 %v198_v20  ;;  %v1240_v24 = vand.u32 4294901760, %v1239_v19 }
  0x48   :  { %5161 = vmatprep.mubr.msk.f32.mxu0 %vm5789_vm0, %v5788_v0  ;;  %5165 = vmatpush3.msra.mxu1 %v5826_v4  ;;  %v1119_v4 = vld [vmem:[#allocation4 + $0x50] sm:$0xff] }
  0x49   :  { %5162 = vmatmul.mubr.f32.vlgmr.msra.gmra.mxu0 %v5837_v12  ;;  %5166 = vmatprep.subr.mxu1 %v5788_v0  ;;  %v6001_v7 = vand.u32 4294901760, %v1119_v4 }
  0x4a   :  { %5175 = vmatprep.subr.mxu0 %v5788_v0  ;;  %5167 = vmatpush3.msra.mxu1 %v5828_v5  ;;  %v1118_v5 = vld [vmem:[#allocation4 + $0x48] sm:$0xff] }
  0x4b   :  { %5176 = vmatpush3.msra.mxu0 %v5883_v35  ;;  %5168 = vmatprep.subr.mxu1 %v5788_v0  ;;  %v6011_v10 = vand.u32 4294901760, %v1118_v5 }
  0x4c   :  { %5177 = vmatprep.subr.mxu0 %v5788_v0  ;;  %5169 = vmatpush3.msra.mxu1 %v5830_v6  ;;  %v5996_v6 = vand.u32 4294901760, %v1130_v2 }
  0x4d   :  { %5178 = vmatpush3.msra.mxu0 %v5893_v39  ;;  %5170 = vmatprep.subr.mxu1 %v5788_v0  ;;  %v6034_v15 = vsub.f32 %v1118_v5, %v6011_v10 }
  0x4e   :  { %5179 = vmatprep.subr.mxu0 %v5788_v0  ;;  %5171 = vmatpush3.msra.mxu1 %v5832_v9  ;;  %v1117_v9 = vld [vmem:[#allocation4 + $0x40] sm:$0xff]  ;;  %v6016_v11 = vsub.f32 %v1130_v2, %v5996_v6  ;;  %v6213_v2 = vand.u32 4294901760, %v2180_v63 }
  0x4f   :  { %5172 = vmatprep.mubr.msk.f32.mxu1 %vm5789_vm0, %v5788_v0  ;;  %5180 = vmatpush3.msra.mxu0 %v5901_v42  ;;  %v6024_v13 = vand.u32 4294901760, %v1117_v9  ;;  %v1252_v20 = vand.u32 4294901760, %v6034_v15 }
  0x50   :  { %5173 = vmatmul.mubr.f32.vlgmr.msra.gmra.mxu1 %v5837_v12  ;;  %5181 = vmatprep.subr.mxu0 %v5788_v0  ;;  %v6022_v12 = vsub.f32 %v1119_v4, %v6001_v7  ;;  %v1203_v16 = vand.u32 4294901760, %v6016_v11  ;;  %v2178_v4 = vld [vmem:[#allocation4 + $0x88] sm:$0xff] }
  0x51   :  { %5186 = vmatprep.subr.mxu1 %v5788_v0  ;;  %5182 = vmatpush3.msra.mxu0 %v5914_v45  ;;  %v6044_v17 = vsub.f32 %v1117_v9, %v6024_v13  ;;  %v1253_v25 = vsub.f32 %v6034_v15, %v1252_v20  ;;  %v6235_v9 = vand.u32 4294901760, %v2178_v4 }
  0x52   :  { %5187 = vmatpush3.msra.mxu1 %v710_v56  ;;  %5183 = vmatprep.mubr.msk.f32.mxu0 %vm5789_vm0, %v5788_v0  ;;  %v1245_v18 = vand.u32 4294901760, %v6022_v12  ;;  %v1204_v21 = vsub.f32 %v6016_v11, %v1203_v16 }
  0x53   :  { %5188 = vmatprep.subr.mxu1 %v5788_v0  ;;  %5197 = vmatprep.subr.mxu0 %v5788_v0  ;;  %v1259_v23 = vand.u32 4294901760, %v6044_v17  ;;  %v1254_v29 = vand.u32 4294901760, %v1253_v25 }
  0x54   :  { %5184 = vmatmul.mubr.f32.vlgmr.msra.gmra.mxu0 %v675_v58  ;;  %5189 = vmatpush3.msra.mxu1 %v717_v59  ;;  %v1246_v22 = vsub.f32 %v6022_v12, %v1245_v18  ;;  %v1205_v26 = vand.u32 4294901760, %v1204_v21 }
  0x55   :  { %5198 = vmatpush3.msra.mxu0 %v5898_v40  ;;  %5190 = vmatprep.subr.mxu1 %v5788_v0  ;;  %v1260_v28 = vsub.f32 %v6044_v17, %v1259_v23  ;;  %v1647_v40 = vld [vmem:[#allocation4 + $0x60] sm:$0xff] }
  0x56   :  { %5199 = vmatprep.subr.mxu0 %v5788_v0  ;;  %5191 = vmatpush3.msra.mxu1 %v724_v61  ;;  %v1247_v27 = vand.u32 4294901760, %v1246_v22 }
  0x57   :  { %5200 = vmatpush3.msra.mxu0 %v5912_v44  ;;  %5192 = vmatprep.subr.mxu1 %v5788_v0  ;;  %v1261_v30 = vand.u32 4294901760, %v1260_v28  ;;  %v6136_v44 = vand.u32 4294901760, %v1647_v40 }
  0x58   :  { %5201 = vmatprep.subr.mxu0 %v5788_v0  ;;  %5193 = vmatpush3.msra.mxu1 %v731_v62  ;;  %v2175_v62 = vld [vmem:[#allocation2 + $0x8] sm:$0x3] }
  0x59   :  { %5194 = vmatprep.mubr.msk.f32.mxu1 %vm5789_vm0, %v5788_v0  ;;  %5202 = vmatpush3.msra.mxu0 %v5922_v47  ;;  %v2190_v1 = vsel %vm67_vm1, %v2175_v62, 0  ;;  %v3240_v62 = vld [vmem:[#allocation4 + $0xd8] sm:$0xff] }
  0x5a   :  { %5195 = vmatmul.mubr.f32.vlgmr.msra.gmra.mxu1 %v5890_v38  ;;  %5203 = vmatprep.subr.mxu0 %v5788_v0  ;;  %v6220_v5 = vand.u32 4294901760, %v2190_v1 }
  0x5b   :  { %5208 = vmatprep.subr.mxu1 %v5788_v0  ;;  %5204 = vmatpush3.msra.mxu0 %v5932_v49 }
  0x5c   :  { %5209 = vmatpush3.msra.mxu1 %v5883_v35  ;;  %5205 = vmatprep.mubr.msk.f32.mxu0 %vm5789_vm0, %v5788_v0 }
  0x5d   :  { %5210 = vmatprep.subr.mxu1 %v5788_v0  ;;  %5219 = vmatprep.subr.mxu0 %v5788_v0 }
  0x5e   :  { %5206 = vmatmul.mubr.f32.vlgmr.msra.gmra.mxu0 %v5906_v43  ;;  %5211 = vmatpush3.msra.mxu1 %v5893_v39 }
  0x5f   :  { %5220 = vmatpush3.msra.mxu0 %v708_v46  ;;  %5212 = vmatprep.subr.mxu1 %v5788_v0  ;;  %v6146_v46 = vsub.f32 %v1648_v36, %v6123_v41 }
  0x60   :  { %5221 = vmatprep.subr.mxu0 %v5788_v0  ;;  %5213 = vmatpush3.msra.mxu1 %v5901_v42 }
  0x61   :  { %5222 = vmatpush3.msra.mxu0 %v715_v50  ;;  %5214 = vmatprep.subr.mxu1 %v5788_v0  ;;  %v1782_v51 = vand.u32 4294901760, %v6146_v46 }
  0x62   :  { %5223 = vmatprep.subr.mxu0 %v5788_v0  ;;  %5215 = vmatpush3.msra.mxu1 %v5914_v45 }
  0x63   :  { %5216 = vmatprep.mubr.msk.f32.mxu1 %vm5789_vm0, %v5788_v0  ;;  %5224 = vmatpush3.msra.mxu0 %v722_v52  ;;  %v1783_v56 = vsub.f32 %v6146_v46, %v1782_v51 }
  0x64   :  { %5217 = vmatmul.mubr.f32.vlgmr.msra.gmra.mxu1 %v673_v48  ;;  %5225 = vmatprep.subr.mxu0 %v5788_v0  ;;  %v6156_v48 = vsub.f32 %v1647_v40, %v6136_v44 }
  0x65   :  { %5230 = vmatprep.subr.mxu1 %v5788_v0  ;;  %5226 = vmatpush3.msra.mxu0 %v729_v55  ;;  %v1784_v60 = vand.u32 4294901760, %v1783_v56 }
  0x66   :  { %5227 = vmatprep.mubr.msk.f32.mxu0 %vm5789_vm0, %v5788_v0  ;;  %5231 = vmatpush3.msra.mxu1 %v5883_v35  ;;  %v1649_v35 = vld [vmem:[#allocation4 + $0x70] sm:$0xff]  ;;  %v1789_v54 = vand.u32 4294901760, %v6156_v48 }
  0x67   :  { %5228 = vmatmul.mubr.f32.vlgmr.msra.gmra.mxu0 %v5890_v38  ;;  %5232 = vmatprep.subr.mxu1 %v5788_v0 }
  0x68   :  { %5241 = vmatprep.subr.mxu0 %v5788_v0  ;;  %5233 = vmatpush3.msra.mxu1 %v5893_v39  ;;  %v6118_v39 = vsub.f32 %v1650_v32, %v6101_v34  ;;  %v1790_v59 = vsub.f32 %v6156_v48, %v1789_v54 }
  0x69   :  { %5242 = vmatpush3.msra.mxu0 %v5989_v3  ;;  %5234 = vmatprep.subr.mxu1 %v5788_v0 }
  0x6a   :  { %5243 = vmatprep.subr.mxu0 %v5788_v0  ;;  %5235 = vmatpush3.msra.mxu1 %v5901_v42  ;;  %v6128_v42 = vsub.f32 %v1660_v33, %v6108_v37  ;;  %v1791_v61 = vand.u32 4294901760, %v1790_v59  ;;  %v6325_v33 = vand.u32 4294901760, %v2710_v31 }
  0x6b   :  { %5244 = vmatpush3.msra.mxu0 %v6001_v7  ;;  %5236 = vmatprep.subr.mxu1 %v5788_v0 }
  0x6c   :  { %5245 = vmatprep.subr.mxu0 %v5788_v0  ;;  %5237 = vmatpush3.msra.mxu1 %v5914_v45  ;;  %v1768_v45 = vand.u32 4294901760, %v6118_v39  ;;  %v1733_v47 = vand.u32 4294901760, %v6128_v42 }
  0x6d   :  { %5238 = vmatprep.mubr.msk.f32.mxu1 %vm5789_vm0, %v5788_v0  ;;  %5246 = vmatpush3.msra.mxu0 %v6011_v10 }
  0x6e   :  { %5239 = vmatmul.mubr.f32.vlgmr.msra.gmra.mxu1 %v5890_v38  ;;  %5247 = vmatprep.subr.mxu0 %v5788_v0  ;;  %v6113_v38 = vand.u32 4294901760, %v1649_v35  ;;  %v1769_v50 = vsub.f32 %v6118_v39, %v1768_v45  ;;  %v1734_v52 = vsub.f32 %v6128_v42, %v1733_v47 }
  0x6f   :  { %5252 = vmatprep.subr.mxu1 %v5788_v0  ;;  %5248 = vmatpush3.msra.mxu0 %v6024_v13 }
  0x70   :  { %5253 = vmatpush3.msra.mxu1 %v1240_v24  ;;  %5249 = vmatprep.mubr.msk.f32.mxu0 %vm5789_vm0, %v5788_v0  ;;  %v6134_v43 = vsub.f32 %v1649_v35, %v6113_v38  ;;  %v1770_v55 = vand.u32 4294901760, %v1769_v50  ;;  %v1735_v57 = vand.u32 4294901760, %v1734_v52  ;;  %v2708_v35 = vld [vmem:[#allocation4 + $0xa8] sm:$0xff] }
  0x71   :  { %5254 = vmatprep.subr.mxu1 %v5788_v0  ;;  %5263 = vmatprep.subr.mxu0 %v5788_v0  ;;  %v6347_v40 = vand.u32 4294901760, %v2708_v35 }
  0x72   :  { %5250 = vmatmul.mubr.f32.vlgmr.msra.gmra.mxu0 %v1205_v26  ;;  %5255 = vmatpush3.msra.mxu1 %v1247_v27  ;;  %v1775_v49 = vand.u32 4294901760, %v6134_v43 }
  0x73   :  { %5264 = vmatpush3.msra.mxu0 %v6006_v8  ;;  %5256 = vmatprep.subr.mxu1 %v5788_v0  ;;  %v2177_v8 = vld [vmem:[#allocation4 + $0x80] sm:$0xff] }
  0x74   :  { %5265 = vmatprep.subr.mxu0 %v5788_v0  ;;  %5257 = vmatpush3.msra.mxu1 %v1254_v29  ;;  %v1776_v53 = vsub.f32 %v6134_v43, %v1775_v49 }
  0x75   :  { %5266 = vmatpush3.msra.mxu0 %v6022_v12  ;;  %5258 = vmatprep.subr.mxu1 %v5788_v0  ;;  %v6248_v12 = vand.u32 4294901760, %v2177_v8 }
  0x76   :  { %5267 = vmatprep.subr.mxu0 %v5788_v0  ;;  %5259 = vmatpush3.msra.mxu1 %v1261_v30  ;;  %v1777_v58 = vand.u32 4294901760, %v1776_v53  ;;  %v2705_v30 = vld [vmem:[#allocation2 + $0xa] sm:$0x3] }
  0x77   :  { %5260 = vmatprep.mubr.msk.f32.mxu1 %vm5789_vm0, %v5788_v0  ;;  %5268 = vmatpush3.msra.mxu0 %v6034_v15  ;;  %v2720_v32 = vsel %vm67_vm1, %v2705_v30, 0  ;;  %v3770_v30 = vld [vmem:[#allocation4 + $0xf8] sm:$0xff] }
  0x78   :  { %5261 = vmatmul.mubr.f32.vlgmr.msra.gmra.mxu1 %v5996_v6  ;;  %5269 = vmatprep.subr.mxu0 %v5788_v0  ;;  %v6332_v36 = vand.u32 4294901760, %v2720_v32 }
  0x79   :  { %5274 = vmatprep.subr.mxu1 %v5788_v0  ;;  %5270 = vmatpush3.msra.mxu0 %v6044_v17 }
  0x7a   :  { %5275 = vmatpush3.msra.mxu1 %v5989_v3  ;;  %5271 = vmatprep.mubr.msk.f32.mxu0 %vm5789_vm0, %v5788_v0 }
  0x7b   :  { %5276 = vmatprep.subr.mxu1 %v5788_v0  ;;  %5285 = vmatprep.subr.mxu0 %v5788_v0 }
  0x7c   :  { %5272 = vmatmul.mubr.f32.vlgmr.msra.gmra.mxu0 %v6016_v11  ;;  %5277 = vmatpush3.msra.mxu1 %v6001_v7 }
  0x7d   :  { %5286 = vmatpush3.msra.mxu0 %v1238_v14  ;;  %5278 = vmatprep.subr.mxu1 %v5788_v0  ;;  %v6258_v14 = vsub.f32 %v2178_v4, %v6235_v9 }
  0x7e   :  { %5287 = vmatprep.subr.mxu0 %v5788_v0  ;;  %5279 = vmatpush3.msra.mxu1 %v6011_v10 }
  0x7f   :  { %5288 = vmatpush3.msra.mxu0 %v1245_v18  ;;  %5280 = vmatprep.subr.mxu1 %v5788_v0  ;;  %v2312_v19 = vand.u32 4294901760, %v6258_v14 }
  0x80   :  { %5289 = vmatprep.subr.mxu0 %v5788_v0  ;;  %5281 = vmatpush3.msra.mxu1 %v6024_v13 }
  0x81   :  { %5282 = vmatprep.mubr.msk.f32.mxu1 %vm5789_vm0, %v5788_v0  ;;  %5290 = vmatpush3.msra.mxu0 %v1252_v20  ;;  %v2313_v24 = vsub.f32 %v6258_v14, %v2312_v19 }
  0x82   :  { %5283 = vmatmul.mubr.f32.vlgmr.msra.gmra.mxu1 %v1203_v16  ;;  %5291 = vmatprep.subr.mxu0 %v5788_v0  ;;  %v6268_v16 = vsub.f32 %v2177_v8, %v6248_v12 }
  0x83   :  { %5296 = vmatprep.subr.mxu1 %v5788_v0  ;;  %5292 = vmatpush3.msra.mxu0 %v1259_v23  ;;  %v2314_v28 = vand.u32 4294901760, %v2313_v24 }
  0x84   :  { %5293 = vmatprep.mubr.msk.f32.mxu0 %vm5789_vm0, %v5788_v0  ;;  %5297 = vmatpush3.msra.mxu1 %v5989_v3  ;;  %v2179_v3 = vld [vmem:[#allocation4 + $0x90] sm:$0xff]  ;;  %v2319_v22 = vand.u32 4294901760, %v6268_v16 }
  0x85   :  { %5294 = vmatmul.mubr.f32.vlgmr.msra.gmra.mxu0 %v5996_v6  ;;  %5298 = vmatprep.subr.mxu1 %v5788_v0 }
  0x86   :  { %5307 = vmatprep.subr.mxu0 %v5788_v0  ;;  %5299 = vmatpush3.msra.mxu1 %v6001_v7  ;;  %v6230_v7 = vsub.f32 %v2180_v63, %v6213_v2  ;;  %v2320_v27 = vsub.f32 %v6268_v16, %v2319_v22 }
  0x87   :  { %5308 = vmatpush3.msra.mxu0 %v6101_v34  ;;  %5300 = vmatprep.subr.mxu1 %v5788_v0 }
  0x88   :  { %5309 = vmatprep.subr.mxu0 %v5788_v0  ;;  %5301 = vmatpush3.msra.mxu1 %v6011_v10  ;;  %v6240_v10 = vsub.f32 %v2190_v1, %v6220_v5  ;;  %v2321_v29 = vand.u32 4294901760, %v2320_v27  ;;  %v6437_v1 = vand.u32 4294901760, %v3240_v62 }
  0x89   :  { %5310 = vmatpush3.msra.mxu0 %v6113_v38  ;;  %5302 = vmatprep.subr.mxu1 %v5788_v0 }
  0x8a   :  { %5311 = vmatprep.subr.mxu0 %v5788_v0  ;;  %5303 = vmatpush3.msra.mxu1 %v6024_v13  ;;  %v2298_v13 = vand.u32 4294901760, %v6230_v7  ;;  %v2263_v15 = vand.u32 4294901760, %v6240_v10 }
  0x8b   :  { %5304 = vmatprep.mubr.msk.f32.mxu1 %vm5789_vm0, %v5788_v0  ;;  %5312 = vmatpush3.msra.mxu0 %v6123_v41 }
  0x8c   :  { %5305 = vmatmul.mubr.f32.vlgmr.msra.gmra.mxu1 %v5996_v6  ;;  %5313 = vmatprep.subr.mxu0 %v5788_v0  ;;  %v6225_v6 = vand.u32 4294901760, %v2179_v3  ;;  %v2299_v18 = vsub.f32 %v6230_v7, %v2298_v13  ;;  %v2264_v20 = vsub.f32 %v6240_v10, %v2263_v15 }
  0x8d   :  { %5318 = vmatprep.subr.mxu1 %v5788_v0  ;;  %5314 = vmatpush3.msra.mxu0 %v6136_v44 }
  0x8e   :  { %5319 = vmatpush3.msra.mxu1 %v1770_v55  ;;  %5315 = vmatprep.mubr.msk.f32.mxu0 %vm5789_vm0, %v5788_v0  ;;  %v6246_v11 = vsub.f32 %v2179_v3, %v6225_v6  ;;  %v2300_v23 = vand.u32 4294901760, %v2299_v18  ;;  %v2265_v25 = vand.u32 4294901760, %v2264_v20  ;;  %v3238_v3 = vld [vmem:[#allocation4 + $0xc8] sm:$0xff] }
  0x8f   :  { %5320 = vmatprep.subr.mxu1 %v5788_v0  ;;  %5329 = vmatprep.subr.mxu0 %v5788_v0  ;;  %v6459_v8 = vand.u32 4294901760, %v3238_v3 }
  0x90   :  { %5316 = vmatmul.mubr.f32.vlgmr.msra.gmra.mxu0 %v1735_v57  ;;  %5321 = vmatpush3.msra.mxu1 %v1777_v58  ;;  %v2305_v17 = vand.u32 4294901760, %v6246_v11 }
  0x91   :  { %5330 = vmatpush3.msra.mxu0 %v6118_v39  ;;  %5322 = vmatprep.subr.mxu1 %v5788_v0  ;;  %v2707_v39 = vld [vmem:[#allocation4 + $0xa0] sm:$0xff] }
  0x92   :  { %5331 = vmatprep.subr.mxu0 %v5788_v0  ;;  %5323 = vmatpush3.msra.mxu1 %v1784_v60  ;;  %v2306_v21 = vsub.f32 %v6246_v11, %v2305_v17 }
  0x93   :  { %5332 = vmatpush3.msra.mxu0 %v6134_v43  ;;  %5324 = vmatprep.subr.mxu1 %v5788_v0  ;;  %v6360_v43 = vand.u32 4294901760, %v2707_v39 }
  0x94   :  { %5333 = vmatprep.subr.mxu0 %v5788_v0  ;;  %5325 = vmatpush3.msra.mxu1 %v1791_v61  ;;  %v2307_v26 = vand.u32 4294901760, %v2306_v21  ;;  %v3235_v61 = vld [vmem:[#allocation2 + $0xc] sm:$0x3] }
  0x95   :  { %5326 = vmatprep.mubr.msk.f32.mxu1 %vm5789_vm0, %v5788_v0  ;;  %5334 = vmatpush3.msra.mxu0 %v6146_v46  ;;  %v3250_v63 = vsel %vm67_vm1, %v3235_v61, 0 }
  0x96   :  { %5327 = vmatmul.mubr.f32.vlgmr.msra.gmra.mxu1 %v6108_v37  ;;  %5335 = vmatprep.subr.mxu0 %v5788_v0  ;;  %v6444_v4 = vand.u32 4294901760, %v3250_v63 }
  0x97   :  { %5340 = vmatprep.subr.mxu1 %v5788_v0  ;;  %5336 = vmatpush3.msra.mxu0 %v6156_v48 }
  0x98   :  { %5341 = vmatpush3.msra.mxu1 %v6101_v34  ;;  %5337 = vmatprep.mubr.msk.f32.mxu0 %vm5789_vm0, %v5788_v0 }
  0x99   :  { %5342 = vmatprep.subr.mxu1 %v5788_v0  ;;  %5351 = vmatprep.subr.mxu0 %v5788_v0 }
  0x9a   :  { %5338 = vmatmul.mubr.f32.vlgmr.msra.gmra.mxu0 %v6128_v42  ;;  %5343 = vmatpush3.msra.mxu1 %v6113_v38 }
  0x9b   :  { %5352 = vmatpush3.msra.mxu0 %v1768_v45  ;;  %5344 = vmatprep.subr.mxu1 %v5788_v0  ;;  %v6370_v45 = vsub.f32 %v2708_v35, %v6347_v40 }
  0x9c   :  { %5353 = vmatprep.subr.mxu0 %v5788_v0  ;;  %5345 = vmatpush3.msra.mxu1 %v6123_v41 }
  0x9d   :  { %5354 = vmatpush3.msra.mxu0 %v1775_v49  ;;  %5346 = vmatprep.subr.mxu1 %v5788_v0  ;;  %v2842_v50 = vand.u32 4294901760, %v6370_v45 }
  0x9e   :  { %5355 = vmatprep.subr.mxu0 %v5788_v0  ;;  %5347 = vmatpush3.msra.mxu1 %v6136_v44 }
  0x9f   :  { %5348 = vmatprep.mubr.msk.f32.mxu1 %vm5789_vm0, %v5788_v0  ;;  %5356 = vmatpush3.msra.mxu0 %v1782_v51  ;;  %v2843_v55 = vsub.f32 %v6370_v45, %v2842_v50 }
  0xa0   :  { %5349 = vmatmul.mubr.f32.vlgmr.msra.gmra.mxu1 %v1733_v47  ;;  %5357 = vmatprep.subr.mxu0 %v5788_v0  ;;  %v6380_v47 = vsub.f32 %v2707_v39, %v6360_v43 }
  0xa1   :  { %5362 = vmatprep.subr.mxu1 %v5788_v0  ;;  %5358 = vmatpush3.msra.mxu0 %v1789_v54  ;;  %v2844_v59 = vand.u32 4294901760, %v2843_v55 }
  0xa2   :  { %5359 = vmatprep.mubr.msk.f32.mxu0 %vm5789_vm0, %v5788_v0  ;;  %5363 = vmatpush3.msra.mxu1 %v6101_v34  ;;  %v2709_v34 = vld [vmem:[#allocation4 + $0xb0] sm:$0xff]  ;;  %v2849_v53 = vand.u32 4294901760, %v6380_v47 }
  0xa3   :  { %5360 = vmatmul.mubr.f32.vlgmr.msra.gmra.mxu0 %v6108_v37  ;;  %5364 = vmatprep.subr.mxu1 %v5788_v0 }
  0xa4   :  { %5373 = vmatprep.subr.mxu0 %v5788_v0  ;;  %5365 = vmatpush3.msra.mxu1 %v6113_v38  ;;  %v6342_v38 = vsub.f32 %v2710_v31, %v6325_v33  ;;  %v2850_v58 = vsub.f32 %v6380_v47, %v2849_v53 }
  0xa5   :  { %5374 = vmatpush3.msra.mxu0 %v6213_v2  ;;  %5366 = vmatprep.subr.mxu1 %v5788_v0 }
  0xa6   :  { %5375 = vmatprep.subr.mxu0 %v5788_v0  ;;  %5367 = vmatpush3.msra.mxu1 %v6123_v41  ;;  %v6352_v41 = vsub.f32 %v2720_v32, %v6332_v36  ;;  %v2851_v60 = vand.u32 4294901760, %v2850_v58  ;;  %v6549_v32 = vand.u32 4294901760, %v3770_v30 }
  0xa7   :  { %5376 = vmatpush3.msra.mxu0 %v6225_v6  ;;  %5368 = vmatprep.subr.mxu1 %v5788_v0 }
  0xa8   :  { %5377 = vmatprep.subr.mxu0 %v5788_v0  ;;  %5369 = vmatpush3.msra.mxu1 %v6136_v44  ;;  %v2828_v44 = vand.u32 4294901760, %v6342_v38  ;;  %v2793_v46 = vand.u32 4294901760, %v6352_v41 }
  0xa9   :  { %5370 = vmatprep.mubr.msk.f32.mxu1 %vm5789_vm0, %v5788_v0  ;;  %5378 = vmatpush3.msra.mxu0 %v6235_v9 }
  0xaa   :  { %5371 = vmatmul.mubr.f32.vlgmr.msra.gmra.mxu1 %v6108_v37  ;;  %5379 = vmatprep.subr.mxu0 %v5788_v0  ;;  %v6337_v37 = vand.u32 4294901760, %v2709_v34  ;;  %v2829_v49 = vsub.f32 %v6342_v38, %v2828_v44  ;;  %v2794_v51 = vsub.f32 %v6352_v41, %v2793_v46 }
  0xab   :  { %5384 = vmatprep.subr.mxu1 %v5788_v0  ;;  %5380 = vmatpush3.msra.mxu0 %v6248_v12 }
  0xac   :  { %5385 = vmatpush3.msra.mxu1 %v2300_v23  ;;  %5381 = vmatprep.mubr.msk.f32.mxu0 %vm5789_vm0, %v5788_v0  ;;  %v6358_v42 = vsub.f32 %v2709_v34, %v6337_v37  ;;  %v2830_v54 = vand.u32 4294901760, %v2829_v49  ;;  %v2795_v56 = vand.u32 4294901760, %v2794_v51  ;;  %v3768_v34 = vld [vmem:[#allocation4 + $0xe8] sm:$0xff] }
  0xad   :  { %5386 = vmatprep.subr.mxu1 %v5788_v0  ;;  %5395 = vmatprep.subr.mxu0 %v5788_v0  ;;  %v6571_v39 = vand.u32 4294901760, %v3768_v34 }
  0xae   :  { %5382 = vmatmul.mubr.f32.vlgmr.msra.gmra.mxu0 %v2265_v25  ;;  %5387 = vmatpush3.msra.mxu1 %v2307_v26  ;;  %v2835_v48 = vand.u32 4294901760, %v6358_v42 }
  0xaf   :  { %5396 = vmatpush3.msra.mxu0 %v6230_v7  ;;  %5388 = vmatprep.subr.mxu1 %v5788_v0  ;;  %v3237_v7 = vld [vmem:[#allocation4 + $0xc0] sm:$0xff] }
  0xb0   :  { %5397 = vmatprep.subr.mxu0 %v5788_v0  ;;  %5389 = vmatpush3.msra.mxu1 %v2314_v28  ;;  %v2836_v52 = vsub.f32 %v6358_v42, %v2835_v48 }
  0xb1   :  { %5398 = vmatpush3.msra.mxu0 %v6246_v11  ;;  %5390 = vmatprep.subr.mxu1 %v5788_v0  ;;  %v6472_v11 = vand.u32 4294901760, %v3237_v7 }
  0xb2   :  { %5399 = vmatprep.subr.mxu0 %v5788_v0  ;;  %5391 = vmatpush3.msra.mxu1 %v2321_v29  ;;  %v2837_v57 = vand.u32 4294901760, %v2836_v52  ;;  %v3765_v29 = vld [vmem:[#allocation2 + $0xe] sm:$0x3]  ;;  %v4830_v52 = vld [vmem:[#allocation6] ss:$0 sm:$0xff] }
  0xb3   :  { %5392 = vmatprep.mubr.msk.f32.mxu1 %vm5789_vm0, %v5788_v0  ;;  %5400 = vmatpush3.msra.mxu0 %v6258_v14  ;;  %v3780_v31 = vsel %vm67_vm1, %v3765_v29, 0 }
  0xb4   :  { %5393 = vmatmul.mubr.f32.vlgmr.msra.gmra.mxu1 %v6220_v5  ;;  %5401 = vmatprep.subr.mxu0 %v5788_v0  ;;  %v6556_v35 = vand.u32 4294901760, %v3780_v31 }
  0xb5   :  { %5406 = vmatprep.subr.mxu1 %v5788_v0  ;;  %5402 = vmatpush3.msra.mxu0 %v6268_v16 }
  0xb6   :  { %5407 = vmatpush3.msra.mxu1 %v6213_v2  ;;  %5403 = vmatprep.mubr.msk.f32.mxu0 %vm5789_vm0, %v5788_v0 }
  0xb7   :  { %5408 = vmatprep.subr.mxu1 %v5788_v0  ;;  %5417 = vmatprep.subr.mxu0 %v5788_v0 }
  0xb8   :  { %5404 = vmatmul.mubr.f32.vlgmr.msra.gmra.mxu0 %v6240_v10  ;;  %5409 = vmatpush3.msra.mxu1 %v6225_v6 }
  0xb9   :  { %5418 = vmatpush3.msra.mxu0 %v2298_v13  ;;  %5410 = vmatprep.subr.mxu1 %v5788_v0  ;;  %v6482_v13 = vsub.f32 %v3238_v3, %v6459_v8 }
  0xba   :  { %5419 = vmatprep.subr.mxu0 %v5788_v0  ;;  %5411 = vmatpush3.msra.mxu1 %v6235_v9 }
  0xbb   :  { %5420 = vmatpush3.msra.mxu0 %v2305_v17  ;;  %5412 = vmatprep.subr.mxu1 %v5788_v0  ;;  %v3372_v18 = vand.u32 4294901760, %v6482_v13 }
  0xbc   :  { %5421 = vmatprep.subr.mxu0 %v5788_v0  ;;  %5413 = vmatpush3.msra.mxu1 %v6248_v12 }
  0xbd   :  { %5414 = vmatprep.mubr.msk.f32.mxu1 %vm5789_vm0, %v5788_v0  ;;  %5422 = vmatpush3.msra.mxu0 %v2312_v19  ;;  %v3373_v23 = vsub.f32 %v6482_v13, %v3372_v18 }
  0xbe   :  { %5415 = vmatmul.mubr.f32.vlgmr.msra.gmra.mxu1 %v2263_v15  ;;  %5423 = vmatprep.subr.mxu0 %v5788_v0  ;;  %v6492_v15 = vsub.f32 %v3237_v7, %v6472_v11 }
  0xbf   :  { %5428 = vmatprep.subr.mxu1 %v5788_v0  ;;  %5424 = vmatpush3.msra.mxu0 %v2319_v22  ;;  %v3374_v27 = vand.u32 4294901760, %v3373_v23  ;;  %v4299_v23 = vld [vmem:[#allocation4 + $0x110] sm:$0xff] }
  0xc0   :  { %5425 = vmatprep.mubr.msk.f32.mxu0 %vm5789_vm0, %v5788_v0  ;;  %5429 = vmatpush3.msra.mxu1 %v6213_v2  ;;  %v3239_v2 = vld [vmem:[#allocation4 + $0xd0] sm:$0xff]  ;;  %v3379_v21 = vand.u32 4294901760, %v6492_v15  ;;  %v6675_v29 = vand.u32 4294901760, %v4299_v23 }
  0xc1   :  { %5426 = vmatmul.mubr.f32.vlgmr.msra.gmra.mxu0 %v6220_v5  ;;  %5430 = vmatprep.subr.mxu1 %v5788_v0 }
  0xc2   :  { %5439 = vmatprep.subr.mxu0 %v5788_v0  ;;  %5431 = vmatpush3.msra.mxu1 %v6225_v6  ;;  %v6454_v6 = vsub.f32 %v3240_v62, %v6437_v1  ;;  %v3380_v26 = vsub.f32 %v6492_v15, %v3379_v21 }
  0xc3   :  { %5440 = vmatpush3.msra.mxu0 %v6325_v33  ;;  %5432 = vmatprep.subr.mxu1 %v5788_v0 }
  0xc4   :  { %5441 = vmatprep.subr.mxu0 %v5788_v0  ;;  %5433 = vmatpush3.msra.mxu1 %v6235_v9  ;;  %v6464_v9 = vsub.f32 %v3250_v63, %v6444_v4  ;;  %v3381_v28 = vand.u32 4294901760, %v3380_v26  ;;  %v4298_v26 = vld [vmem:[#allocation4 + $0x108] sm:$0xff] }
  0xc5   :  { %5442 = vmatpush3.msra.mxu0 %v6337_v37  ;;  %5434 = vmatprep.subr.mxu1 %v5788_v0 }
  0xc6   :  { %5443 = vmatprep.subr.mxu0 %v5788_v0  ;;  %5435 = vmatpush3.msra.mxu1 %v6248_v12  ;;  %v3358_v12 = vand.u32 4294901760, %v6454_v6  ;;  %v3323_v14 = vand.u32 4294901760, %v6464_v9 }
  0xc7   :  { %5436 = vmatprep.mubr.msk.f32.mxu1 %vm5789_vm0, %v5788_v0  ;;  %5444 = vmatpush3.msra.mxu0 %v6347_v40 }
  0xc8   :  { %5437 = vmatmul.mubr.f32.vlgmr.msra.gmra.mxu1 %v6220_v5  ;;  %5445 = vmatprep.subr.mxu0 %v5788_v0  ;;  %v6449_v5 = vand.u32 4294901760, %v3239_v2  ;;  %v3359_v17 = vsub.f32 %v6454_v6, %v3358_v12  ;;  %v3324_v19 = vsub.f32 %v6464_v9, %v3323_v14 }
  0xc9   :  { %5450 = vmatprep.subr.mxu1 %v5788_v0  ;;  %5446 = vmatpush3.msra.mxu0 %v6360_v43 }
  0xca   :  { %5451 = vmatpush3.msra.mxu1 %v2830_v54  ;;  %5447 = vmatprep.mubr.msk.f32.mxu0 %vm5789_vm0, %v5788_v0  ;;  %v6470_v10 = vsub.f32 %v3239_v2, %v6449_v5  ;;  %v3360_v22 = vand.u32 4294901760, %v3359_v17  ;;  %v3325_v24 = vand.u32 4294901760, %v3324_v19  ;;  %v4295_v17 = vld [vmem:[#allocation2 + $0x10] sm:$0x3] }
  0xcb   :  { %5452 = vmatprep.subr.mxu1 %v5788_v0  ;;  %5461 = vmatprep.subr.mxu0 %v5788_v0  ;;  %v4310_v19 = vsel %vm67_vm1, %v4295_v17, 0 }
  0xcc   :  { %5448 = vmatmul.mubr.f32.vlgmr.msra.gmra.mxu0 %v2795_v56  ;;  %5453 = vmatpush3.msra.mxu1 %v2837_v57  ;;  %v3365_v16 = vand.u32 4294901760, %v6470_v10 }
  0xcd   :  { %5462 = vmatpush3.msra.mxu0 %v6342_v38  ;;  %5454 = vmatprep.subr.mxu1 %v5788_v0  ;;  %v3767_v38 = vld [vmem:[#allocation4 + $0xe0] sm:$0xff] }
  0xce   :  { %5463 = vmatprep.subr.mxu0 %v5788_v0  ;;  %5455 = vmatpush3.msra.mxu1 %v2844_v59  ;;  %v3366_v20 = vsub.f32 %v6470_v10, %v3365_v16 }
  0xcf   :  { %5464 = vmatpush3.msra.mxu0 %v6358_v42  ;;  %5456 = vmatprep.subr.mxu1 %v5788_v0 }
  0xd0   :  { %5465 = vmatprep.subr.mxu0 %v5788_v0  ;;  %5457 = vmatpush3.msra.mxu1 %v2851_v60  ;;  %v3367_v25 = vand.u32 4294901760, %v3366_v20 }
  0xd1   :  { %5458 = vmatprep.mubr.msk.f32.mxu1 %vm5789_vm0, %v5788_v0  ;;  %5466 = vmatpush3.msra.mxu0 %v6370_v45 }
  0xd2   :  { %5459 = vmatmul.mubr.f32.vlgmr.msra.gmra.mxu1 %v6332_v36  ;;  %5467 = vmatprep.subr.mxu0 %v5788_v0 }
  0xd3   :  { %5472 = vmatprep.subr.mxu1 %v5788_v0  ;;  %5468 = vmatpush3.msra.mxu0 %v6380_v47 }
  0xd4   :  { %5473 = vmatpush3.msra.mxu1 %v6325_v33  ;;  %5469 = vmatprep.mubr.msk.f32.mxu0 %vm5789_vm0, %v5788_v0 }
  0xd5   :  { %5474 = vmatprep.subr.mxu1 %v5788_v0  ;;  %5483 = vmatprep.subr.mxu0 %v5788_v0 }
  0xd6   :  { %5470 = vmatmul.mubr.f32.vlgmr.msra.gmra.mxu0 %v6352_v41  ;;  %5475 = vmatpush3.msra.mxu1 %v6337_v37  ;;  %v6576_v41 = vsub.f32 %v3780_v31, %v6556_v35 }
  0xd7   :  { %5484 = vmatpush3.msra.mxu0 %v2828_v44  ;;  %5476 = vmatprep.subr.mxu1 %v5788_v0 }
  0xd8   :  { %5485 = vmatprep.subr.mxu0 %v5788_v0  ;;  %5477 = vmatpush3.msra.mxu1 %v6347_v40  ;;  %v3853_v47 = vand.u32 4294901760, %v6576_v41 }
  0xd9   :  { %5486 = vmatpush3.msra.mxu0 %v2835_v48  ;;  %5478 = vmatprep.subr.mxu1 %v5788_v0 }
  0xda   :  { %5487 = vmatprep.subr.mxu0 %v5788_v0  ;;  %5479 = vmatpush3.msra.mxu1 %v6360_v43  ;;  %v3854_v55 = vsub.f32 %v6576_v41, %v3853_v47 }
  0xdb   :  { %5480 = vmatprep.mubr.msk.f32.mxu1 %vm5789_vm0, %v5788_v0  ;;  %5488 = vmatpush3.msra.mxu0 %v2842_v50 }
  0xdc   :  { %5481 = vmatmul.mubr.f32.vlgmr.msra.gmra.mxu1 %v2793_v46  ;;  %5489 = vmatprep.subr.mxu0 %v5788_v0  ;;  %v6594_v46 = vsub.f32 %v3768_v34, %v6571_v39  ;;  %v3855_v63 = vand.u32 4294901760, %v3854_v55 }
  0xdd   :  { %5494 = vmatprep.subr.mxu1 %v5788_v0  ;;  %5490 = vmatpush3.msra.mxu0 %v2849_v53 }
  0xde   :  { %5491 = vmatprep.mubr.msk.f32.mxu0 %vm5789_vm0, %v5788_v0  ;;  %5495 = vmatpush3.msra.mxu1 %v6325_v33  ;;  %v3769_v33 = vld [vmem:[#allocation4 + $0xf0] sm:$0xff]  ;;  %v3902_v54 = vand.u32 4294901760, %v6594_v46 }
  0xdf   :  { %5492 = vmatmul.mubr.f32.vlgmr.msra.gmra.mxu0 %v6332_v36  ;;  %5496 = vmatprep.subr.mxu1 %v5788_v0 }
  0xe0   :  { %5505 = vmatprep.subr.mxu0 %v5788_v0  ;;  %5497 = vmatpush3.msra.mxu1 %v6337_v37  ;;  %v6566_v37 = vsub.f32 %v3770_v30, %v6549_v32  ;;  %v3903_v62 = vsub.f32 %v6594_v46, %v3902_v54 }
  0xe1   :  { %5506 = vmatpush3.msra.mxu0 %v6437_v1  ;;  %5498 = vmatprep.subr.mxu1 %v5788_v0 }
  0xe2   :  { %5507 = vmatprep.subr.mxu0 %v5788_v0  ;;  %5499 = vmatpush3.msra.mxu1 %v6347_v40  ;;  %v3888_v45 = vand.u32 4294901760, %v6566_v37 }
  0xe3   :  { %5508 = vmatpush3.msra.mxu0 %v6449_v5  ;;  %5500 = vmatprep.subr.mxu1 %v5788_v0 }
  0xe4   :  { %5509 = vmatprep.subr.mxu0 %v5788_v0  ;;  %5501 = vmatpush3.msra.mxu1 %v6360_v43  ;;  %v6584_v43 = vand.u32 4294901760, %v3767_v38  ;;  %v3889_v51 = vsub.f32 %v6566_v37, %v3888_v45 }
  0xe5   :  { %5502 = vmatprep.mubr.msk.f32.mxu1 %vm5789_vm0, %v5788_v0  ;;  %5510 = vmatpush3.msra.mxu0 %v6459_v8 }
  0xe6   :  { %5503 = vmatmul.mubr.f32.vlgmr.msra.gmra.mxu1 %v6332_v36  ;;  %5511 = vmatprep.subr.mxu0 %v5788_v0  ;;  %v6561_v36 = vand.u32 4294901760, %v3769_v33  ;;  %v6604_v49 = vsub.f32 %v3767_v38, %v6584_v43  ;;  %v3890_v60 = vand.u32 4294901760, %v3889_v51 }
  0xe7   :  { %5516 = vmatprep.subr.mxu1 %v5788_v0  ;;  %5512 = vmatpush3.msra.mxu0 %v6472_v11 }
  0xe8   :  { %5517 = vmatpush3.msra.mxu1 %v3360_v22  ;;  %5513 = vmatprep.mubr.msk.f32.mxu0 %vm5789_vm0, %v5788_v0  ;;  %v6582_v42 = vsub.f32 %v3769_v33, %v6561_v36  ;;  %v3909_v58 = vand.u32 4294901760, %v6604_v49  ;;  %v4297_v33 = vld [vmem:[#allocation4 + $0x100] sm:$0xff] }
  0xe9   :  { %5518 = vmatprep.subr.mxu1 %v5788_v0  ;;  %5527 = vmatprep.subr.mxu0 %v5788_v0 }
  0xea   :  { %5514 = vmatmul.mubr.f32.vlgmr.msra.gmra.mxu0 %v3325_v24  ;;  %5519 = vmatpush3.msra.mxu1 %v3367_v25  ;;  %v3895_v50 = vand.u32 4294901760, %v6582_v42  ;;  %v3910_v2 = vsub.f32 %v6604_v49, %v3909_v58 }
  0xeb   :  { %5528 = vmatpush3.msra.mxu0 %v6454_v6  ;;  %5520 = vmatprep.subr.mxu1 %v5788_v0  ;;  %v5790_v6 = vmov 1966171168  }
  0xec   :  { %5529 = vmatprep.subr.mxu0 %v5788_v0  ;;  %5521 = vmatpush3.msra.mxu1 %v3374_v27  ;;  %v3896_v57 = vsub.f32 %v6582_v42, %v3895_v50  ;;  %v558_v7 = vunpack.c.l.s4 %v5790_v6  ;;  %v6670_v27 = vand.u32 4294901760, %v4310_v19 }
  0xed   :  { %5530 = vmatpush3.msra.mxu0 %v6470_v10  ;;  %5522 = vmatprep.subr.mxu1 %v5788_v0  ;;  %v3911_v10 = vand.u32 4294901760, %v3910_v2 }
  0xee   :  { %5531 = vmatprep.subr.mxu0 %v5788_v0  ;;  %5523 = vmatpush3.msra.mxu1 %v3381_v28 }
  0xef   :  { %5524 = vmatprep.mubr.msk.f32.mxu1 %vm5789_vm0, %v5788_v0  ;;  %5532 = vmatpush3.msra.mxu0 %v6482_v13 }
  0xf0   :  { %5525 = vmatmul.mubr.f32.vlgmr.msra.gmra.mxu1 %v6444_v4  ;;  %5533 = vmatprep.subr.mxu0 %v5788_v0 }
  0xf1   :  { %5538 = vmatprep.subr.mxu1 %v5788_v0  ;;  %5534 = vmatpush3.msra.mxu0 %v6492_v15  ;;  %v559_v15 = vunpack.c.0.s8 %v558_v7 }
  0xf2   :  { %5539 = vmatpush3.msra.mxu1 %v6437_v1  ;;  %5535 = vmatprep.mubr.msk.f32.mxu0 %vm5789_vm0, %v5788_v0 }
  0xf3   :  { %5540 = vmatprep.subr.mxu1 %v5788_v0  ;;  %5549 = vmatprep.subr.mxu0 %v5788_v0 }
  0xf4   :  { %5536 = vmatmul.mubr.f32.vlgmr.msra.gmra.mxu0 %v6464_v9  ;;  %5541 = vmatpush3.msra.mxu1 %v6449_v5 }
  0xf5   :  { %5550 = vmatpush3.msra.mxu0 %v3358_v12  ;;  %5542 = vmatprep.subr.mxu1 %v5788_v0 }
  0xf6   :  { %5551 = vmatprep.subr.mxu0 %v5788_v0  ;;  %5543 = vmatpush3.msra.mxu1 %v6459_v8 }
  0xf7   :  { %5552 = vmatpush3.msra.mxu0 %v3365_v16  ;;  %v146_v40 = vpop.f32.mrf.mxu0  ;;  %5544 = vmatprep.subr.mxu1 %v5788_v0 }
  0xf8   :  { %5553 = vmatprep.subr.mxu0 %v5788_v0  ;;  %5545 = vmatpush3.msra.mxu1 %v6472_v11  ;;  %v147_v59 = vadd.f32 %v4830_v52, %v146_v40 }
  0xf9   :  { %5546 = vmatprep.mubr.msk.f32.mxu1 %vm5789_vm0, %v5788_v0  ;;  %v5119_v44 = vpop.f32.mrf.mxu0  ;;  %5554 = vmatpush3.msra.mxu0 %v3372_v18  ;;  %v4300_v18 = vld [vmem:[#allocation4 + $0x118] sm:$0xff] }
  0xfa   :  { %5547 = vmatmul.mubr.f32.vlgmr.msra.gmra.mxu1 %v3323_v14  ;;  %5555 = vmatprep.subr.mxu0 %v5788_v0  ;;  %v6663_v22 = vand.u32 4294901760, %v4300_v18  ;;  %v6692_v44 = vsub.f32 %v4310_v19, %v6670_v27 }
  0xfb   :  { %5560 = vmatprep.subr.mxu1 %v5788_v0  ;;  %5556 = vmatpush3.msra.mxu0 %v3379_v21  ;;  %v237_v48 = vpop.f32.mrf.mxu1 }
  0xfc   :  { %5557 = vmatprep.mubr.msk.f32.mxu0 %vm5789_vm0, %v5788_v0  ;;  %5561 = vmatpush3.msra.mxu1 %v6437_v1  ;;  %v3897_v1 = vand.u32 4294901760, %v3896_v57  ;;  %v238_v3 = vadd.f32 %v237_v48, %v147_v59  ;;  %v6681_v31 = vsub.f32 %v4300_v18, %v6663_v22  ;;  %v6700_v48 = vand.u32 4294901760, %v4297_v33 }
  0xfd   :  { %5558 = vmatmul.mubr.f32.vlgmr.msra.gmra.mxu0 %v6444_v4  ;;  %5562 = vmatprep.subr.mxu1 %v5788_v0  ;;  %v5130_v53 = vpop.f32.mrf.mxu1 }
  0xfe   :  { %5571 = vmatprep.subr.mxu0 %v5788_v0  ;;  %5563 = vmatpush3.msra.mxu1 %v6449_v5  ;;  %v4418_v51 = vand.u32 4294901760, %v6681_v31 }
  0xff   :  { %5572 = vmatpush3.msra.mxu0 %v6549_v32  ;;  %5564 = vmatprep.subr.mxu1 %v5788_v0 }
 0x100   :  { %5573 = vmatprep.subr.mxu0 %v5788_v0  ;;  %v317_v56 = vpop.f32.mrf.mxu0  ;;  %5565 = vmatpush3.msra.mxu1 %v6459_v8  ;;  %v560_v8 = vlaneseq }
 0x101   :  { %5574 = vmatpush3.msra.mxu0 %v6561_v36  ;;  %5566 = vmatprep.subr.mxu1 %v5788_v0 }
 0x102   :  { %5575 = vmatprep.subr.mxu0 %v5788_v0  ;;  %v5141_v61 = vpop.f32.mrf.mxu0  ;;  %5567 = vmatpush3.msra.mxu1 %v6472_v11  ;;  %v318_v11 = vadd.f32 %v317_v56, %v238_v3  ;;  %v561_v16 = vshrl.u32 %v560_v8, 7 }
 0x103   :  { %5568 = vmatprep.mubr.msk.f32.mxu1 %vm5789_vm0, %v5788_v0  ;;  %5576 = vmatpush3.msra.mxu0 %v6571_v39 }
 0x104   :  { %5569 = vmatmul.mubr.f32.vlgmr.msra.gmra.mxu1 %v6444_v4  ;;  %5577 = vmatprep.subr.mxu0 %v5788_v0  ;;  %v3904_v4 = vand.u32 4294901760, %v3903_v62  ;;  %v6659_v21 = vsub.s32 %v559_v15, %v561_v16 }
 0x105   :  { %5582 = vmatprep.subr.mxu1 %v5788_v0  ;;  %5578 = vmatpush3.msra.mxu0 %v6584_v43 }
 0x106   :  { %5583 = vmatpush3.msra.mxu1 %v3890_v60  ;;  %v394_v5 = vpop.f32.mrf.mxu1  ;;  %5579 = vmatprep.mubr.msk.f32.mxu0 %vm5789_vm0, %v5788_v0 }
 0x107   :  { %5584 = vmatprep.subr.mxu1 %v5788_v0  ;;  %5593 = vmatprep.subr.mxu0 %v5788_v0  ;;  %v395_v13 = vadd.f32 %v394_v5, %v318_v11 }
 0x108   :  { %5580 = vmatmul.mubr.f32.vlgmr.msra.gmra.mxu0 %v3855_v63  ;;  %v5152_v9 = vpop.f32.mrf.mxu1  ;;  %5585 = vmatpush3.msra.mxu1 %v3897_v1 }
 0x109   :  { %5594 = vmatpush3.msra.mxu0 %v6566_v37  ;;  %v477_v12 = vpop.f32.mrf.mxu0  ;;  %5586 = vmatprep.subr.mxu1 %v5788_v0  ;;  %v6686_v37 = vand.u32 4294901760, %v4298_v26 }
 0x10a   :  { %5595 = vmatprep.subr.mxu0 %v5788_v0  ;;  %5587 = vmatpush3.msra.mxu1 %v3904_v4  ;;  %v478_v20 = vadd.f32 %v477_v12, %v395_v13 }
 0x10b   :  { %5596 = vmatpush3.msra.mxu0 %v6582_v42  ;;  %v5163_v14 = vpop.f32.mrf.mxu0  ;;  %5588 = vmatprep.subr.mxu1 %v5788_v0  ;;  %v6698_v42 = vsub.f32 %v4299_v23, %v6675_v29  ;;  %v6715_v52 = vsub.f32 %v4298_v26, %v6686_v37 }
 0x10c   :  { %5597 = vmatprep.subr.mxu0 %v5788_v0  ;;  %5589 = vmatpush3.msra.mxu1 %v3911_v10 }
 0x10d   :  { %5590 = vmatprep.mubr.msk.f32.mxu1 %vm5789_vm0, %v5788_v0  ;;  %5598 = vmatpush3.msra.mxu0 %v6594_v46  ;;  %v4425_v53 = vand.u32 4294901760, %v6698_v42 }
 0x10e   :  { %5591 = vmatmul.mubr.f32.vlgmr.msra.gmra.mxu1 %v6556_v35  ;;  %5599 = vmatprep.subr.mxu0 %v5788_v0 }
 0x10f   :  { %5604 = vmatprep.subr.mxu1 %v5788_v0  ;;  %5600 = vmatpush3.msra.mxu0 %v6604_v49  ;;  %v4419_v49 = vsub.f32 %v6681_v31, %v4418_v51 }
 0x110   :  { %5605 = vmatpush3.msra.mxu1 %v6549_v32  ;;  %v552_v24 = vpop.f32.mrf.mxu1  ;;  %5601 = vmatprep.mubr.msk.f32.mxu0 %vm5789_vm0, %v5788_v0 }
 0x111   :  { %5606 = vmatprep.subr.mxu1 %v5788_v0  ;;  %v553_v25 = vadd.f32 %v552_v24, %v478_v20  ;;  %5615 = vmatprep.subr.mxu0 %v5788_v0  ;;  %v4420_v60 = vand.u32 4294901760, %v4419_v49  ;;  %v4832_v20 = vld [vmem:[#allocation6 + $0x2] ss:$0 sm:$0xff] }
 0x112   :  { %5602 = vmatmul.mubr.f32.vlgmr.msra.gmra.mxu0 %v6576_v41  ;;  %v5174_v28 = vpop.f32.mrf.mxu1  ;;  %5607 = vmatpush3.msra.mxu1 %v6561_v36  ;;  %v4383_v41 = vand.u32 4294901760, %v6692_v44 }
 0x113   :  { %5616 = vmatpush3.msra.mxu0 %v3888_v45  ;;  %v563_v30 = vrot.slane %v553_v25, %v6659_v21  ;;  %5608 = vmatprep.subr.mxu1 %v5788_v0 }
 0x114   :  { %5617 = vmatprep.subr.mxu0 %v5788_v0  ;;  %v677_v34 = vpop.f32.mrf.mxu0  ;;  %5609 = vmatpush3.msra.mxu1 %v6571_v39  ;;  %v4384_v56 = vsub.f32 %v6692_v44, %v4383_v41 }
 0x115   :  { %5618 = vmatpush3.msra.mxu0 %v3895_v50  ;;  %v564_v38 = vcombine.high %v563_v30, %v563_v30  ;;  %v571_v40 = vrot.slane %v563_v30, %v6659_v21  ;;  %5610 = vmatprep.subr.mxu1 %v5788_v0 }
 0x116   :  { %5619 = vmatprep.subr.mxu0 %v5788_v0  ;;  %v5185_v45 = vpop.f32.mrf.mxu0  ;;  %5611 = vmatpush3.msra.mxu1 %v6584_v43  ;;  %v4385_v62 = vand.u32 4294901760, %v4384_v56 }
 0x117   :  { %5612 = vmatprep.mubr.msk.f32.mxu1 %vm5789_vm0, %v5788_v0  ;;  %v578_v50 = vrot.slane %v564_v38, %v6659_v21  ;;  %582 = vst.msk [vmem:[%s6915_s3] sm:$0x1] %vm581_vm2, %v571_v40  ;;  %5620 = vmatpush3.msra.mxu0 %v3902_v54  ;;  %v4831_v54 = vld [vmem:[#allocation6 + $0x1] ss:$0 sm:$0xff] }
 0x118   :  { %5613 = vmatmul.mubr.f32.vlgmr.msra.gmra.mxu1 %v3853_v47  ;;  %5621 = vmatprep.subr.mxu0 %v5788_v0  ;;  %v6729_v47 = vsub.f32 %v4297_v33, %v6700_v48  ;;  %v678_v59 = vadd.f32 %v4831_v54, %v677_v34 }
 0x119   :  { %5626 = vmatprep.subr.mxu1 %v5788_v0  ;;  %583 = vst.msk [vmem:[%s6915_s3 + $0x10] sm:$0x1] %vm581_vm2, %v578_v50  ;;  %5622 = vmatpush3.msra.mxu0 %v3909_v58 }
 0x11a   :  { %5623 = vmatprep.mubr.msk.f32.mxu0 %vm5789_vm0, %v5788_v0  ;;  %v768_v46 = vpop.f32.mrf.mxu1  ;;  %5627 = vmatpush3.msra.mxu1 %v6549_v32  ;;  %v4432_v32 = vand.u32 4294901760, %v6715_v52  ;;  %v4439_v58 = vand.u32 4294901760, %v6729_v47 }
 0x11b   :  { %5624 = vmatmul.mubr.f32.vlgmr.msra.gmra.mxu0 %v6556_v35  ;;  %5628 = vmatprep.subr.mxu1 %v5788_v0  ;;  %v769_v1 = vadd.f32 %v768_v46, %v678_v59 }
 0x11c   :  { %5637 = vmatprep.subr.mxu0 %v5788_v0  ;;  %v5196_v55 = vpop.f32.mrf.mxu1  ;;  %5629 = vmatpush3.msra.mxu1 %v6561_v36  ;;  %v4426_v36 = vsub.f32 %v6698_v42, %v4425_v53 }
 0x11d   :  { %5638 = vmatpush3.msra.mxu0 %v6663_v22  ;;  %5630 = vmatprep.subr.mxu1 %v5788_v0 }
 0x11e   :  { %5639 = vmatprep.subr.mxu0 %v5788_v0  ;;  %v848_v57 = vpop.f32.mrf.mxu0  ;;  %5631 = vmatpush3.msra.mxu1 %v6571_v39  ;;  %v4433_v39 = vsub.f32 %v6715_v52, %v4432_v32  ;;  %v4427_v63 = vand.u32 4294901760, %v4426_v36 }
 0x11f   :  { %5640 = vmatpush3.msra.mxu0 %v6675_v29  ;;  %5632 = vmatprep.subr.mxu1 %v5788_v0  ;;  %v849_v4 = vadd.f32 %v848_v57, %v769_v1 }
 0x120   :  { %5641 = vmatprep.subr.mxu0 %v5788_v0  ;;  %v5207_v61 = vpop.f32.mrf.mxu0  ;;  %5633 = vmatpush3.msra.mxu1 %v6584_v43  ;;  %v4440_v43 = vsub.f32 %v6729_v47, %v4439_v58 }
 0x121   :  { %5634 = vmatprep.mubr.msk.f32.mxu1 %vm5789_vm0, %v5788_v0  ;;  %5642 = vmatpush3.msra.mxu0 %v6686_v37 }
 0x122   :  { %5635 = vmatmul.mubr.f32.vlgmr.msra.gmra.mxu1 %v6556_v35  ;;  %5643 = vmatprep.subr.mxu0 %v5788_v0  ;;  %v4434_v35 = vand.u32 4294901760, %v4433_v39  ;;  %v4441_v5 = vand.u32 4294901760, %v4440_v43 }
 0x123   :  { %5648 = vmatprep.subr.mxu1 %v5788_v0  ;;  %5644 = vmatpush3.msra.mxu0 %v6700_v48 }
 0x124   :  { %5649 = vmatpush3.msra.mxu1 %v4420_v60  ;;  %v925_v2 = vpop.f32.mrf.mxu1  ;;  %5645 = vmatprep.mubr.msk.f32.mxu0 %vm5789_vm0, %v5788_v0 }
 0x125   :  { %5650 = vmatprep.subr.mxu1 %v5788_v0  ;;  %5659 = vmatprep.subr.mxu0 %v5788_v0  ;;  %v926_v7 = vadd.f32 %v925_v2, %v849_v4 }
 0x126   :  { %5646 = vmatmul.mubr.f32.vlgmr.msra.gmra.mxu0 %v4385_v62  ;;  %v5218_v3 = vpop.f32.mrf.mxu1  ;;  %5651 = vmatpush3.msra.mxu1 %v4427_v63 }
 0x127   :  { %5660 = vmatpush3.msra.mxu0 %v6681_v31  ;;  %v1008_v6 = vpop.f32.mrf.mxu0  ;;  %5652 = vmatprep.subr.mxu1 %v5788_v0  ;;  %v4834_v3 = vld [vmem:[#allocation6 + $0x4] ss:$0 sm:$0xff] }
 0x128   :  { %5661 = vmatprep.subr.mxu0 %v5788_v0  ;;  %5653 = vmatpush3.msra.mxu1 %v4434_v35  ;;  %v1009_v9 = vadd.f32 %v1008_v6, %v926_v7 }
 0x129   :  { %5662 = vmatpush3.msra.mxu0 %v6698_v42  ;;  %v5229_v8 = vpop.f32.mrf.mxu0  ;;  %5654 = vmatprep.subr.mxu1 %v5788_v0 }
 0x12a   :  { %5663 = vmatprep.subr.mxu0 %v5788_v0  ;;  %5655 = vmatpush3.msra.mxu1 %v4441_v5 }
 0x12b   :  { %5656 = vmatprep.mubr.msk.f32.mxu1 %vm5789_vm0, %v5788_v0  ;;  %5664 = vmatpush3.msra.mxu0 %v6715_v52  ;;  %v4833_v52 = vld [vmem:[#allocation6 + $0x3] ss:$0 sm:$0xff] }
 0x12c   :  { %5657 = vmatmul.mubr.f32.vlgmr.msra.gmra.mxu1 %v6670_v27  ;;  %5665 = vmatprep.subr.mxu0 %v5788_v0 }
 0x12d   :  { %5670 = vmatprep.subr.mxu1 %v5788_v0  ;;  %5666 = vmatpush3.msra.mxu0 %v6729_v47 }
 0x12e   :  { %5671 = vmatpush3.msra.mxu1 %v6663_v22  ;;  %v1083_v10 = vpop.f32.mrf.mxu1  ;;  %5667 = vmatprep.mubr.msk.f32.mxu0 %vm5789_vm0, %v5788_v0 }
 0x12f   :  { %5672 = vmatprep.subr.mxu1 %v5788_v0  ;;  %v1084_v11 = vadd.f32 %v1083_v10, %v1009_v9  ;;  %5681 = vmatprep.subr.mxu0 %v5788_v0 }
 0x130   :  { %5668 = vmatmul.mubr.f32.vlgmr.msra.gmra.mxu0 %v6692_v44  ;;  %v5240_v12 = vpop.f32.mrf.mxu1  ;;  %5673 = vmatpush3.msra.mxu1 %v6675_v29 }
 0x131   :  { %5682 = vmatpush3.msra.mxu0 %v4418_v51  ;;  %v1094_v13 = vrot.slane %v1084_v11, %v6659_v21  ;;  %5674 = vmatprep.subr.mxu1 %v5788_v0 }
 0x132   :  { %5683 = vmatprep.subr.mxu0 %v5788_v0  ;;  %v1207_v14 = vpop.f32.mrf.mxu0  ;;  %5675 = vmatpush3.msra.mxu1 %v6686_v37 }
 0x133   :  { %5684 = vmatpush3.msra.mxu0 %v4425_v53  ;;  %v1095_v15 = vcombine.high %v1094_v13, %v1094_v13  ;;  %v1102_v16 = vrot.slane %v1094_v13, %v6659_v21  ;;  %5676 = vmatprep.subr.mxu1 %v5788_v0  ;;  %v1208_v25 = vadd.f32 %v4832_v20, %v1207_v14 }
 0x134   :  { %5685 = vmatprep.subr.mxu0 %v5788_v0  ;;  %v5251_v17 = vpop.f32.mrf.mxu0  ;;  %5677 = vmatpush3.msra.mxu1 %v6700_v48 }
 0x135   :  { %5678 = vmatprep.mubr.msk.f32.mxu1 %vm5789_vm0, %v5788_v0  ;;  %v1109_v18 = vrot.slane %v1095_v15, %v6659_v21  ;;  %1112 = vst.msk [vmem:[%s6915_s3 + $0x1] sm:$0x1] %vm581_vm2, %v1102_v16  ;;  %5686 = vmatpush3.msra.mxu0 %v4432_v32 }
 0x136   :  { %5679 = vmatmul.mubr.f32.vlgmr.msra.gmra.mxu1 %v4383_v41  ;;  %5687 = vmatprep.subr.mxu0 %v5788_v0 }
 0x137   :  { %5692 = vmatprep.subr.mxu1 %v5788_v0  ;;  %1113 = vst.msk [vmem:[%s6915_s3 + $0x11] sm:$0x1] %vm581_vm2, %v1109_v18  ;;  %5688 = vmatpush3.msra.mxu0 %v4439_v58 }
 0x138   :  { %5689 = vmatprep.mubr.msk.f32.mxu0 %vm5789_vm0, %v5788_v0  ;;  %v1298_v19 = vpop.f32.mrf.mxu1  ;;  %5693 = vmatpush3.msra.mxu1 %v6663_v22 }
 0x139   :  { %5690 = vmatmul.mubr.f32.vlgmr.msra.gmra.mxu0 %v6670_v27  ;;  %5694 = vmatprep.subr.mxu1 %v5788_v0  ;;  %v1299_v26 = vadd.f32 %v1298_v19, %v1208_v25 }
 0x13a   :  { %5700 = vmatprep.mubr.msk.f32.mxu1 %vm5789_vm0, %v5788_v0  ;;  %v5262_v23 = vpop.f32.mrf.mxu1  ;;  %5695 = vmatpush3.msra.mxu1 %v6675_v29 }
 0x13b   :  { %5696 = vmatprep.subr.mxu1 %v5788_v0 }
 0x13c   :  { %v1378_v24 = vpop.f32.mrf.mxu0  ;;  %5697 = vmatpush3.msra.mxu1 %v6686_v37 }
 0x13d   :  { %5698 = vmatprep.subr.mxu1 %v5788_v0  ;;  %v1379_v31 = vadd.f32 %v1378_v24, %v1299_v26 }
 0x13e   :  { %v5273_v22 = vpop.f32.mrf.mxu0  ;;  %5699 = vmatpush3.msra.mxu1 %v6700_v48 }
 0x13f   :  { %5701 = vmatmul.mubr.f32.vlgmr.msra.gmra.mxu1 %v6670_v27 }
 0x142   :  { %v1455_v28 = vpop.f32.mrf.mxu1 }
 0x143   :  { %v1456_v34 = vadd.f32 %v1455_v28, %v1379_v31  ;;  %v4835_v28 = vld [vmem:[#allocation6 + $0x5] ss:$0 sm:$0xff] }
 0x144   :  { %v5284_v30 = vpop.f32.mrf.mxu1 }
 0x145   :  { %v1538_v33 = vpop.f32.mrf.mxu0 }
 0x146   :  { %v1539_v38 = vadd.f32 %v1538_v33, %v1456_v34 }
 0x147   :  { %v5295_v29 = vpop.f32.mrf.mxu0 }
 0x14c   :  { %v1613_v40 = vpop.f32.mrf.mxu1 }
 0x14d   :  { %v1614_v44 = vadd.f32 %v1613_v40, %v1539_v38 }
 0x14e   :  { %v5306_v45 = vpop.f32.mrf.mxu1 }
 0x14f   :  { %v1624_v37 = vrot.slane %v1614_v44, %v6659_v21 }
 0x150   :  { %v1737_v42 = vpop.f32.mrf.mxu0 }
 0x151   :  { %v1625_v0 = vcombine.high %v1624_v37, %v1624_v37  ;;  %v1632_v50 = vrot.slane %v1624_v37, %v6659_v21  ;;  %v1738_v47 = vadd.f32 %v4833_v52, %v1737_v42 }
 0x152   :  { %v5317_v48 = vpop.f32.mrf.mxu0 }
 0x153   :  { %v1639_v27 = vrot.slane %v1625_v0, %v6659_v21  ;;  %1642 = vst.msk [vmem:[%s6915_s3 + $0x2] sm:$0x1] %vm581_vm2, %v1632_v50 }
 0x155   :  { %1643 = vst.msk [vmem:[%s6915_s3 + $0x12] sm:$0x1] %vm581_vm2, %v1639_v27 }
 0x156   :  { %v1828_v51 = vpop.f32.mrf.mxu1 }
 0x157   :  { %v1829_v49 = vadd.f32 %v1828_v51, %v1738_v47 }
 0x158   :  { %v5328_v41 = vpop.f32.mrf.mxu1 }
 0x15a   :  { %v1908_v46 = vpop.f32.mrf.mxu0 }
 0x15b   :  { %v1909_v32 = vadd.f32 %v1908_v46, %v1829_v49 }
 0x15c   :  { %v5339_v53 = vpop.f32.mrf.mxu0 }
 0x160   :  { %v1985_v54 = vpop.f32.mrf.mxu1 }
 0x161   :  { %v1986_v57 = vadd.f32 %v1985_v54, %v1909_v32  ;;  %v4836_v54 = vld [vmem:[#allocation6 + $0x6] ss:$0 sm:$0xff] }
 0x162   :  { %v5350_v55 = vpop.f32.mrf.mxu1 }
 0x163   :  { %v2068_v56 = vpop.f32.mrf.mxu0 }
 0x164   :  { %v2069_v58 = vadd.f32 %v2068_v56, %v1986_v57 }
 0x165   :  { %v5361_v36 = vpop.f32.mrf.mxu0 }
 0x16a   :  { %v2143_v59 = vpop.f32.mrf.mxu1 }
 0x16b   :  { %v2144_v60 = vadd.f32 %v2143_v59, %v2069_v58 }
 0x16c   :  { %v5372_v61 = vpop.f32.mrf.mxu1 }
 0x16d   :  { %v2154_v39 = vrot.slane %v2144_v60, %v6659_v21 }
 0x16e   :  { %v2267_v62 = vpop.f32.mrf.mxu0 }
 0x16f   :  { %v2155_v63 = vcombine.high %v2154_v39, %v2154_v39  ;;  %v2162_v43 = vrot.slane %v2154_v39, %v6659_v21  ;;  %v2268_v6 = vadd.f32 %v4834_v3, %v2267_v62 }
 0x170   :  { %v5383_v1 = vpop.f32.mrf.mxu0 }
 0x171   :  { %v2169_v2 = vrot.slane %v2155_v63, %v6659_v21  ;;  %2172 = vst.msk [vmem:[%s6915_s3 + $0x3] sm:$0x1] %vm581_vm2, %v2162_v43 }
 0x173   :  { %2173 = vst.msk [vmem:[%s6915_s3 + $0x13] sm:$0x1] %vm581_vm2, %v2169_v2 }
 0x174   :  { %v2358_v35 = vpop.f32.mrf.mxu1 }
 0x175   :  { %v2359_v8 = vadd.f32 %v2358_v35, %v2268_v6 }
 0x176   :  { %v5394_v5 = vpop.f32.mrf.mxu1 }
 0x178   :  { %v2438_v4 = vpop.f32.mrf.mxu0 }
 0x179   :  { %v2439_v11 = vadd.f32 %v2438_v4, %v2359_v8 }
 0x17a   :  { %v5405_v7 = vpop.f32.mrf.mxu0 }
 0x17e   :  { %v2515_v9 = vpop.f32.mrf.mxu1 }
 0x17f   :  { %v2516_v13 = vadd.f32 %v2515_v9, %v2439_v11  ;;  %v4837_v9 = vld [vmem:[#allocation6 + $0x7] ss:$0 sm:$0xff] }
 0x180   :  { %v5416_v10 = vpop.f32.mrf.mxu1 }
 0x181   :  { %v2598_v12 = vpop.f32.mrf.mxu0 }
 0x182   :  { %v2599_v15 = vadd.f32 %v2598_v12, %v2516_v13 }
 0x183   :  { %v5427_v14 = vpop.f32.mrf.mxu0 }
 0x188   :  { %v2673_v16 = vpop.f32.mrf.mxu1 }
 0x189   :  { %v2674_v17 = vadd.f32 %v2673_v16, %v2599_v15 }
 0x18a   :  { %v5438_v18 = vpop.f32.mrf.mxu1 }
 0x18b   :  { %v2684_v19 = vrot.slane %v2674_v17, %v6659_v21 }
 0x18c   :  { %v2797_v20 = vpop.f32.mrf.mxu0 }
 0x18d   :  { %v2685_v23 = vcombine.high %v2684_v19, %v2684_v19  ;;  %v2692_v24 = vrot.slane %v2684_v19, %v6659_v21  ;;  %v2798_v33 = vadd.f32 %v4835_v28, %v2797_v20 }
 0x18e   :  { %v5449_v25 = vpop.f32.mrf.mxu0 }
 0x18f   :  { %v2699_v22 = vrot.slane %v2685_v23, %v6659_v21  ;;  %2702 = vst.msk [vmem:[%s6915_s3 + $0x4] sm:$0x1] %vm581_vm2, %v2692_v24 }
 0x191   :  { %2703 = vst.msk [vmem:[%s6915_s3 + $0x14] sm:$0x1] %vm581_vm2, %v2699_v22 }
 0x192   :  { %v2888_v26 = vpop.f32.mrf.mxu1 }
 0x193   :  { %v2889_v29 = vadd.f32 %v2888_v26, %v2798_v33 }
 0x194   :  { %v5460_v30 = vpop.f32.mrf.mxu1 }
 0x196   :  { %v2968_v31 = vpop.f32.mrf.mxu0 }
 0x197   :  { %v2969_v44 = vadd.f32 %v2968_v31, %v2889_v29 }
 0x198   :  { %v5471_v34 = vpop.f32.mrf.mxu0 }
 0x19c   :  { %v3045_v38 = vpop.f32.mrf.mxu1 }
 0x19d   :  { %v3046_v37 = vadd.f32 %v3045_v38, %v2969_v44  ;;  %v4838_v38 = vld [vmem:[#allocation6 + $0x8] ss:$0 sm:$0xff] }
 0x19e   :  { %v5482_v40 = vpop.f32.mrf.mxu1 }
 0x19f   :  { %v3128_v45 = vpop.f32.mrf.mxu0 }
 0x1a0   :  { %v3129_v0 = vadd.f32 %v3128_v45, %v3046_v37 }
 0x1a1   :  { %v5493_v42 = vpop.f32.mrf.mxu0 }
 0x1a6   :  { %v3203_v50 = vpop.f32.mrf.mxu1 }
 0x1a7   :  { %v3204_v48 = vadd.f32 %v3203_v50, %v3129_v0 }
 0x1a8   :  { %v5504_v27 = vpop.f32.mrf.mxu1 }
 0x1a9   :  { %v3214_v51 = vrot.slane %v3204_v48, %v6659_v21 }
 0x1aa   :  { %v3327_v52 = vpop.f32.mrf.mxu0 }
 0x1ab   :  { %v3215_v41 = vcombine.high %v3214_v51, %v3214_v51  ;;  %v3222_v46 = vrot.slane %v3214_v51, %v6659_v21  ;;  %v3328_v56 = vadd.f32 %v4836_v54, %v3327_v52 }
 0x1ac   :  { %v5515_v47 = vpop.f32.mrf.mxu0 }
 0x1ad   :  { %v3229_v53 = vrot.slane %v3215_v41, %v6659_v21  ;;  %3232 = vst.msk [vmem:[%s6915_s3 + $0x5] sm:$0x1] %vm581_vm2, %v3222_v46 }
 0x1af   :  { %3233 = vst.msk [vmem:[%s6915_s3 + $0x15] sm:$0x1] %vm581_vm2, %v3229_v53 }
 0x1b0   :  { %v3418_v49 = vpop.f32.mrf.mxu1 }
 0x1b1   :  { %v3419_v36 = vadd.f32 %v3418_v49, %v3328_v56 }
 0x1b2   :  { %v5526_v55 = vpop.f32.mrf.mxu1 }
 0x1b4   :  { %v3498_v32 = vpop.f32.mrf.mxu0 }
 0x1b5   :  { %v3499_v60 = vadd.f32 %v3498_v32, %v3419_v36 }
 0x1b6   :  { %v5537_v57 = vpop.f32.mrf.mxu0 }
 0x1ba   :  { %v3575_v58 = vpop.f32.mrf.mxu1 }
 0x1bb   :  { %v3576_v39 = vadd.f32 %v3575_v58, %v3499_v60 }
 0x1bc   :  { %v5548_v59 = vpop.f32.mrf.mxu1 }
 0x1bd   :  { %v3658_v61 = vpop.f32.mrf.mxu0 }
 0x1be   :  { %v3659_v63 = vadd.f32 %v3658_v61, %v3576_v39 }
 0x1bf   :  { %v5559_v62 = vpop.f32.mrf.mxu0 }
 0x1c4   :  { %v3733_v43 = vpop.f32.mrf.mxu1 }
 0x1c5   :  { %v3734_v1 = vadd.f32 %v3733_v43, %v3659_v63 }
 0x1c6   :  { %v5570_v2 = vpop.f32.mrf.mxu1 }
 0x1c7   :  { %v3744_v35 = vrot.slane %v3734_v1, %v6659_v21 }
 0x1c8   :  { %v3857_v3 = vpop.f32.mrf.mxu0 }
 0x1c9   :  { %v3745_v5 = vcombine.high %v3744_v35, %v3744_v35  ;;  %v3752_v4 = vrot.slane %v3744_v35, %v6659_v21  ;;  %v3858_v12 = vadd.f32 %v4837_v9, %v3857_v3 }
 0x1ca   :  { %v5581_v6 = vpop.f32.mrf.mxu0 }
 0x1cb   :  { %v3759_v7 = vrot.slane %v3745_v5, %v6659_v21  ;;  %3762 = vst.msk [vmem:[%s6915_s3 + $0x6] sm:$0x1] %vm581_vm2, %v3752_v4 }
 0x1cd   :  { %3763 = vst.msk [vmem:[%s6915_s3 + $0x16] sm:$0x1] %vm581_vm2, %v3759_v7 }
 0x1ce   :  { %v3948_v8 = vpop.f32.mrf.mxu1 }
 0x1cf   :  { %v3949_v14 = vadd.f32 %v3948_v8, %v3858_v12 }
 0x1d0   :  { %v5592_v10 = vpop.f32.mrf.mxu1 }
 0x1d2   :  { %v4028_v11 = vpop.f32.mrf.mxu0 }
 0x1d3   :  { %v4029_v17 = vadd.f32 %v4028_v11, %v3949_v14 }
 0x1d4   :  { %v5603_v13 = vpop.f32.mrf.mxu0 }
 0x1d8   :  { %v4105_v15 = vpop.f32.mrf.mxu1 }
 0x1d9   :  { %v4106_v19 = vadd.f32 %v4105_v15, %v4029_v17 }
 0x1da   :  { %v5614_v16 = vpop.f32.mrf.mxu1 }
 0x1db   :  { %v4188_v18 = vpop.f32.mrf.mxu0 }
 0x1dc   :  { %v4189_v23 = vadd.f32 %v4188_v18, %v4106_v19 }
 0x1dd   :  { %v5625_v20 = vpop.f32.mrf.mxu0 }
 0x1e2   :  { %v4263_v24 = vpop.f32.mrf.mxu1 }
 0x1e3   :  { %v4264_v25 = vadd.f32 %v4263_v24, %v4189_v23 }
 0x1e4   :  { %v5636_v22 = vpop.f32.mrf.mxu1 }
 0x1e5   :  { %v4274_v26 = vrot.slane %v4264_v25, %v6659_v21 }
 0x1e6   :  { %v4387_v28 = vpop.f32.mrf.mxu0 }
 0x1e7   :  { %v4275_v30 = vcombine.high %v4274_v26, %v4274_v26  ;;  %v4282_v31 = vrot.slane %v4274_v26, %v6659_v21  ;;  %v4388_v45 = vadd.f32 %v4838_v38, %v4387_v28 }
 0x1e8   :  { %v5647_v33 = vpop.f32.mrf.mxu0 }
 0x1e9   :  { %v4289_v34 = vrot.slane %v4275_v30, %v6659_v21  ;;  %4292 = vst.msk [vmem:[%s6915_s3 + $0x7] sm:$0x1] %vm581_vm2, %v4282_v31 }
 0x1eb   :  { %4293 = vst.msk [vmem:[%s6915_s3 + $0x17] sm:$0x1] %vm581_vm2, %v4289_v34 }
 0x1ec   :  { %v4478_v29 = vpop.f32.mrf.mxu1 }
 0x1ed   :  { %v4479_v42 = vadd.f32 %v4478_v29, %v4388_v45 }
 0x1ee   :  { %v5658_v40 = vpop.f32.mrf.mxu1 }
 0x1f0   :  { %v4558_v44 = vpop.f32.mrf.mxu0 }
 0x1f1   :  { %v4559_v48 = vadd.f32 %v4558_v44, %v4479_v42 }
 0x1f2   :  { %v5669_v37 = vpop.f32.mrf.mxu0 }
 0x1f6   :  { %v4635_v0 = vpop.f32.mrf.mxu1 }
 0x1f7   :  { %v4636_v51 = vadd.f32 %v4635_v0, %v4559_v48 }
 0x1f8   :  { %v5680_v50 = vpop.f32.mrf.mxu1 }
 0x1f9   :  { %v4718_v27 = vpop.f32.mrf.mxu0 }
 0x1fa   :  { %v4719_v41 = vadd.f32 %v4718_v27, %v4636_v51 }
 0x1fb   :  { %v5691_v52 = vpop.f32.mrf.mxu0 }
 0x1ff   :  { %v4793_v46 = vpop.f32.mrf.mxu1 }
 0x200   :  { %v4794_v47 = vadd.f32 %v4793_v46, %v4719_v41 }
 0x201   :  { %v5702_v53 = vpop.f32.mrf.mxu1 }
 0x202   :  { %v4804_v49 = vrot.slane %v4794_v47, %v6659_v21 }
 0x204   :  { %v4805_v54 = vcombine.high %v4804_v49, %v4804_v49  ;;  %v4812_v55 = vrot.slane %v4804_v49, %v6659_v21 }
 0x206   :  { %v4819_v32 = vrot.slane %v4805_v54, %v6659_v21  ;;  %4822 = vst.msk [vmem:[%s6915_s3 + $0x8] sm:$0x1] %vm581_vm2, %v4812_v55 }
 0x208   :  { %4823 = vst.msk [vmem:[%s6915_s3 + $0x18] sm:$0x1] %vm581_vm2, %v4819_v32 }
 0x209   :  { %4828 = vsyncpa [#allocation3], 1 }
 0x20a   :  { %4829 = vsyncpa [#allocation5], 1 }

</bundles_post_ra>
